<compile_context>
chip_gen: v7x
topology: tpu7x:2x2x1
jax: 0.10.0
libtpu: 0.0.40
codegen_flags: <defaults>
</compile_context>

<pallas_src>
import functools

import jax
import jax.numpy as jnp
from jax.experimental import pallas as pl
from jax.experimental.pallas import tpu as pltpu


def _round_up(x, m):
    return ((x + m - 1) // m) * m


# ----------------------------------------------------------------------------
# Fused Pallas kernel: N-layer GRU + linear head + bounded tanh
# ----------------------------------------------------------------------------
def _gru_policy_kernel(x_ref, w_ref, b_ref, out_ref, *, hidden_dim, seq_len,
                       num_layers, act_dim, b_pad, sp):
    """Ref layout (all packing / transposition done on the XLA side):
      x_ref : [B_pad + T*B_pad, SP]   rows 0:B_pad   = state (cols>=S zero)
                                      rows B_pad:    = traj, time-major blocks
                                                       of B_pad rows (cols>=R zero)
      w_ref : [2*SP + (2L-1)*H + H, 3H]
              [0:SP]        w_s0 (state block of w_ih_l0, zero-padded rows)
              [SP:2SP]      w_r0 (traj  block of w_ih_l0, zero-padded rows)
              [.. +H]       w_hh_l0
              per layer l>=1: w_ih_l, w_hh_l   (H rows each)
              [.. +H]       w_fc, zero-padded to 3H columns
      b_ref : [8*ceil, 3H]  row 2l   = b_ih_l + [b_hh_r, b_hh_z, 0] (fused)
                            row 2l+1 = b_hh_n (first H cols)
                            row 2L   = b_fc      (first A cols)
                            row 2L+1 = (hi-lo)/2 (first A cols)
                            row 2L+2 = (hi+lo)/2 (first A cols)
      out_ref : [B_pad, A]
    """
    H = hidden_dim
    H2 = 2 * H
    H3 = 3 * H
    B = b_pad
    T = seq_len
    L = num_layers
    f32 = jnp.float32

    # ---- static unpack of the packed slabs (one-time, off the chain) --------
    state = x_ref[0:B, :]                                   # [B, SP]
    traj = x_ref[B:, :]                                     # [T*B, SP]

    w_s0 = w_ref[0:sp, :]                                   # [SP, 3H]
    w_r0 = w_ref[sp:2 * sp, :]                              # [SP, 3H]
    off = 2 * sp
    w_ih = [None]
    w_hh = [w_ref[off:off + H, :]]                          # layer 0 hh
    off += H
    for _ in range(1, L):
        w_ih.append(w_ref[off:off + H, :]); off += H
        w_hh.append(w_ref[off:off + H, :]); off += H
    w_fc = w_ref[off:off + H, :]                            # [H, 3H] (cols>=A zero)

    # Hoisted bias broadcasts (JAX does not CSE broadcast_in_dim, so do each
    # exactly once instead of once per recurrent step).
    b_ih_b = []       # [B, 3H] per layer, with b_hh r/z already folded in
    b_hh_n_b = []     # [B, H]  per layer
    for l in range(L):
        b_ih_b.append(jnp.broadcast_to(b_ref[2 * l:2 * l + 1, :], (B, H3)))
        b_hh_n_b.append(jnp.broadcast_to(b_ref[2 * l + 1:2 * l + 2, :H], (B, H)))
    b_fc = b_ref[2 * L:2 * L + 1, :]                        # [1, 3H]
    scale = b_ref[2 * L + 1:2 * L + 2, :]                   # (hi-lo)/2
    mid = b_ref[2 * L + 2:2 * L + 3, :]                     # (hi+lo)/2

    # ---- hoisted layer-0 input-to-hidden matmuls (no dependence on h) -------
    gi_state = jnp.dot(state, w_s0, preferred_element_type=f32) + b_ih_b[0]
    gi_traj = jnp.dot(traj, w_r0, preferred_element_type=f32)      # [T*B, 3H]

    def gru_cell(gi, gh, h, bhn):
        # PyTorch gate order (r, z, n); b_hh_n stays inside the r * (...) term.
        rz = jax.nn.sigmoid(gi[:, :H2] + gh[:, :H2])        # fused r|z sigmoid
        r = rz[:, :H]
        z = rz[:, H:]
        n = jnp.tanh(gi[:, H2:] + r * (gh[:, H2:] + bhn))
        return (1.0 - z) * n + z * h

    # ---- wavefronted recurrence ---------------------------------------------
    # Layer l, time t executes on wavefront step s = t + l. Within one
    # wavefront step the L active cells are mutually independent, so their
    # small-matmul / sigmoid / tanh chains interleave and hide each other's
    # MXU/EUP latency.
    h = [jnp.zeros((B, H), f32) for _ in range(L)]
    feed = [None] * L            # feed[l]: output of layer l at its latest t
    for s in range(T + L - 1):
        new_h = {}
        for l in range(L):
            t = s - l
            if t < 0 or t >= T:
                continue
            if l == 0:
                gi = gi_state + gi_traj[t * B:(t + 1) * B, :]
            else:
                gi = jnp.dot(feed[l - 1], w_ih[l],
                             preferred_element_type=f32) + b_ih_b[l]
            gh = jnp.dot(h[l], w_hh[l], preferred_element_type=f32)
            new_h[l] = gru_cell(gi, gh, h[l], b_hh_n_b[l])
        for l, v in new_h.items():       # commit after the whole wavefront step
            h[l] = v
            feed[l] = v

    # ---- bounded-tanh policy head on the final hidden state -----------------
    logits = jnp.dot(h[L - 1], w_fc, preferred_element_type=f32) + b_fc
    act_full = scale * jnp.tanh(logits) + mid               # [B, 3H]
    out_ref[...] = act_full[:, :act_dim].astype(out_ref.dtype)


# ----------------------------------------------------------------------------
# Wrapper: packs obs + params into 3 lane-dense slabs and calls the kernel
# ----------------------------------------------------------------------------
def _pack_params(params, *, state_dim, ref_obs_dim, hidden_dim, num_layers,
                 act_dim, sp):
    H = hidden_dim
    H3 = 3 * H
    f32 = jnp.float32

    # Weight slab: everything pre-transposed to [in, out] with 3H lanes.
    w_ih0_t = params["w_ih_l0"].T.astype(f32)               # [S+R, 3H]
    w_s0 = jnp.zeros((sp, H3), f32).at[:state_dim].set(w_ih0_t[:state_dim])
    w_r0 = jnp.zeros((sp, H3), f32).at[:ref_obs_dim].set(w_ih0_t[state_dim:])
    rows = [w_s0, w_r0, params["w_hh_l0"].T.astype(f32)]
    for l in range(1, num_layers):
        rows += [params[f"w_ih_l{l}"].T.astype(f32),
                 params[f"w_hh_l{l}"].T.astype(f32)]
    w_fc_pad = jnp.zeros((H, H3), f32).at[:, :act_dim].set(
        params["w_fc"].T.astype(f32))
    rows.append(w_fc_pad)
    w_slab = jnp.concatenate(rows, axis=0)

    # Bias / limit slab.
    n_rows = _round_up(2 * num_layers + 3, 8)
    b_slab = jnp.zeros((n_rows, H3), f32)
    for l in range(num_layers):
        b_ih = params[f"b_ih_l{l}"].astype(f32)
        b_hh = params[f"b_hh_l{l}"].astype(f32)
        fused = b_ih.at[:2 * H].add(b_hh[:2 * H])           # fold b_hh r/z in
        b_slab = b_slab.at[2 * l, :].set(fused)
        b_slab = b_slab.at[2 * l + 1, :H].set(b_hh[2 * H:])
    high = params["act_high"].astype(f32)
    low = params["act_low"].astype(f32)
    b_slab = b_slab.at[2 * num_layers, :act_dim].set(params["b_fc"].astype(f32))
    b_slab = b_slab.at[2 * num_layers + 1, :act_dim].set((high - low) * 0.5)
    b_slab = b_slab.at[2 * num_layers + 2, :act_dim].set((high + low) * 0.5)
    return w_slab, b_slab


def gru_policy_forward(obs, params, *, state_dim, ref_obs_dim, hidden_dim,
                       num_layers):
    """Pallas implementation of GRUPolicy.forward (unidirectional GRU)."""
    assert hidden_dim % 8 == 0, "hidden_dim must be a sublane multiple"
    B, obs_dim = obs.shape
    T = (obs_dim - state_dim) // ref_obs_dim
    act_dim = params["w_fc"].shape[0]
    H = hidden_dim

    B_pad = _round_up(max(B, 8), 8)
    sp = _round_up(max(state_dim, ref_obs_dim), 8)

    obs_f = obs.astype(jnp.float32)
    state = obs_f[:, :state_dim]                                # [B, S]
    traj = obs_f[:, state_dim:].reshape(B, T, ref_obs_dim)      # [B, T, R]
    traj_tb = jnp.transpose(traj, (1, 0, 2))                    # [T, B, R]

    # Data slab: [B_pad, SP] state block + T time-major [B_pad, SP] traj blocks.
    x_packed = jnp.zeros((B_pad + T * B_pad, sp), jnp.float32)
    x_packed = x_packed.at[:B, :state_dim].set(state)
    traj_pad = jnp.zeros((T, B_pad, sp), jnp.float32).at[
        :, :B, :ref_obs_dim].set(traj_tb)
    x_packed = x_packed.at[B_pad:, :].set(traj_pad.reshape(T * B_pad, sp))

    w_slab, b_slab = _pack_params(
        params, state_dim=state_dim, ref_obs_dim=ref_obs_dim,
        hidden_dim=hidden_dim, num_layers=num_layers, act_dim=act_dim, sp=sp)

    kernel = functools.partial(
        _gru_policy_kernel, hidden_dim=H, seq_len=T, num_layers=num_layers,
        act_dim=act_dim, b_pad=B_pad, sp=sp)

    out = pl.pallas_call(
        kernel,
        out_shape=jax.ShapeDtypeStruct((B_pad, act_dim), jnp.float32),
        compiler_params=pltpu.CompilerParams(
            vmem_limit_bytes=32 * 1024 * 1024),
    )(x_packed, w_slab, b_slab)
    return out[:B]


# ----------------------------------------------------------------------------
# Pure-JAX reference (mirrors torch.nn.GRU semantics) for correctness check
# ----------------------------------------------------------------------------
def reference_forward(obs, params, *, state_dim, ref_obs_dim, hidden_dim,
                      num_layers):
    B = obs.shape[0]
    state = obs[:, :state_dim]
    traj = obs[:, state_dim:].reshape(B, -1, ref_obs_dim)
    T = traj.shape[1]
    inp = jnp.concatenate(
        [jnp.broadcast_to(state[:, None, :], (B, T, state_dim)), traj], axis=2)
    for l in range(num_layers):
        w_ih, w_hh = params[f"w_ih_l{l}"], params[f"w_hh_l{l}"]
        b_ih, b_hh = params[f"b_ih_l{l}"], params[f"b_hh_l{l}"]
        h = jnp.zeros((B, hidden_dim), jnp.float32)
        outs = []
        for t in range(T):
            xt = inp[:, t, :]
            gi = xt @ w_ih.T + b_ih
            gh = h @ w_hh.T + b_hh
            i_r, i_z, i_n = jnp.split(gi, 3, axis=1)
            h_r, h_z, h_n = jnp.split(gh, 3, axis=1)
            r = jax.nn.sigmoid(i_r + h_r)
            z = jax.nn.sigmoid(i_z + h_z)
            n = jnp.tanh(i_n + r * h_n)
            h = (1.0 - z) * n + z * h
            outs.append(h)
        inp = jnp.stack(outs, axis=1)
    out = inp[:, -1, :]
    logits = out @ params["w_fc"].T + params["b_fc"]
    high, low = params["act_high"], params["act_low"]
    return (high - low) * 0.5 * jnp.tanh(logits) + (high + low) * 0.5


# ----------------------------------------------------------------------------
# Main
# ----------------------------------------------------------------------------
if __name__ == "__main__":
    # Module hyperparameters (synthetic config).
    batch = 2
    state_dim = 6
    ref_obs_dim = 4
    pre_horizon = 8           # -> seq length T = 8
    hidden_dim = 32
    num_layers = 2
    act_dim = 2

    input_dim = state_dim + ref_obs_dim
    obs_dim = state_dim + pre_horizon * ref_obs_dim

    key = jax.random.PRNGKey(0)
    k_obs, key = jax.random.split(key)
    obs = jax.random.normal(k_obs, (batch, obs_dim), dtype=jnp.float32)

    # Deterministic parameter init (PyTorch GRU/Linear shapes, uniform(-k, k)).
    params = {}
    bound = 1.0 / (hidden_dim ** 0.5)
    for l in range(num_layers):
        d_in = input_dim if l == 0 else hidden_dim
        for name, shape in [(f"w_ih_l{l}", (3 * hidden_dim, d_in)),
                            (f"w_hh_l{l}", (3 * hidden_dim, hidden_dim)),
                            (f"b_ih_l{l}", (3 * hidden_dim,)),
                            (f"b_hh_l{l}", (3 * hidden_dim,))]:
            sub, key = jax.random.split(key)
            params[name] = jax.random.uniform(
                sub, shape, jnp.float32, -bound, bound)
    for name, shape in [("w_fc", (act_dim, hidden_dim)), ("b_fc", (act_dim,))]:
        sub, key = jax.random.split(key)
        params[name] = jax.random.uniform(sub, shape, jnp.float32, -bound, bound)
    params["act_high"] = jnp.full((act_dim,), 1.5, jnp.float32)
    params["act_low"] = jnp.full((act_dim,), -0.5, jnp.float32)

    fwd = jax.jit(functools.partial(
        gru_policy_forward, state_dim=state_dim, ref_obs_dim=ref_obs_dim,
        hidden_dim=hidden_dim, num_layers=num_layers))
    action = jax.block_until_ready(fwd(obs, params))

    ref = reference_forward(
        obs, params, state_dim=state_dim, ref_obs_dim=ref_obs_dim,
        hidden_dim=hidden_dim, num_layers=num_layers)
    assert action.shape == (batch, act_dim)
    max_err = float(jnp.max(jnp.abs(action - ref)))
    assert max_err < 1e-4, (max_err, action, ref)

    print("KERNEL_OK")
</pallas_src>

<mosaic_0001>
module attributes {stable_mosaic.version = 11 : i64} {
  func.func @_gru_policy_kernel(%arg0: memref<72x8xf32, #tpu.memory_space<vmem>>, %arg1: memref<144x96xf32, #tpu.memory_space<vmem>>, %arg2: memref<8x96xf32, #tpu.memory_space<vmem>>, %arg3: memref<8x2xf32, #tpu.memory_space<vmem>>) attributes {dimension_semantics = [], scalar_prefetch = 0 : i64, scratch_operands = 0 : i64, tpu.core_type = #tpu.core_type<tc>} {
    %c0 = arith.constant 0 : index
    %c0_0 = arith.constant 0 : index
    %0 = vector.load %arg0[%c0, %c0_0] : memref<72x8xf32, #tpu.memory_space<vmem>>, vector<8x8xf32>
    %c8 = arith.constant 8 : index
    %c0_1 = arith.constant 0 : index
    %1 = vector.load %arg0[%c8, %c0_1] : memref<72x8xf32, #tpu.memory_space<vmem>>, vector<64x8xf32>
    %c0_2 = arith.constant 0 : index
    %c0_3 = arith.constant 0 : index
    %2 = vector.load %arg1[%c0_2, %c0_3] : memref<144x96xf32, #tpu.memory_space<vmem>>, vector<8x96xf32>
    %c8_4 = arith.constant 8 : index
    %c0_5 = arith.constant 0 : index
    %3 = vector.load %arg1[%c8_4, %c0_5] : memref<144x96xf32, #tpu.memory_space<vmem>>, vector<8x96xf32>
    %c16 = arith.constant 16 : index
    %c0_6 = arith.constant 0 : index
    %4 = vector.load %arg1[%c16, %c0_6] : memref<144x96xf32, #tpu.memory_space<vmem>>, vector<32x96xf32>
    %c48 = arith.constant 48 : index
    %c0_7 = arith.constant 0 : index
    %5 = vector.load %arg1[%c48, %c0_7] : memref<144x96xf32, #tpu.memory_space<vmem>>, vector<32x96xf32>
    %c80 = arith.constant 80 : index
    %c0_8 = arith.constant 0 : index
    %6 = vector.load %arg1[%c80, %c0_8] : memref<144x96xf32, #tpu.memory_space<vmem>>, vector<32x96xf32>
    %c112 = arith.constant 112 : index
    %c0_9 = arith.constant 0 : index
    %7 = vector.load %arg1[%c112, %c0_9] : memref<144x96xf32, #tpu.memory_space<vmem>>, vector<32x96xf32>
    %c0_10 = arith.constant 0 : index
    %c0_11 = arith.constant 0 : index
    %8 = vector.load %arg2[%c0_10, %c0_11] : memref<8x96xf32, #tpu.memory_space<vmem>>, vector<1x96xf32>
    %9 = vector.shape_cast %8 : vector<1x96xf32> to vector<1x96xf32>
    %10 = vector.broadcast %9 : vector<1x96xf32> to vector<8x96xf32>
    %c1 = arith.constant 1 : index
    %c0_12 = arith.constant 0 : index
    %11 = vector.load %arg2[%c1, %c0_12] : memref<8x96xf32, #tpu.memory_space<vmem>>, vector<1x32xf32>
    %12 = vector.shape_cast %11 : vector<1x32xf32> to vector<1x32xf32>
    %13 = vector.broadcast %12 : vector<1x32xf32> to vector<8x32xf32>
    %c2 = arith.constant 2 : index
    %c0_13 = arith.constant 0 : index
    %14 = vector.load %arg2[%c2, %c0_13] : memref<8x96xf32, #tpu.memory_space<vmem>>, vector<1x96xf32>
    %15 = vector.shape_cast %14 : vector<1x96xf32> to vector<1x96xf32>
    %16 = vector.broadcast %15 : vector<1x96xf32> to vector<8x96xf32>
    %c3 = arith.constant 3 : index
    %c0_14 = arith.constant 0 : index
    %17 = vector.load %arg2[%c3, %c0_14] : memref<8x96xf32, #tpu.memory_space<vmem>>, vector<1x32xf32>
    %18 = vector.shape_cast %17 : vector<1x32xf32> to vector<1x32xf32>
    %19 = vector.broadcast %18 : vector<1x32xf32> to vector<8x32xf32>
    %c4 = arith.constant 4 : index
    %c0_15 = arith.constant 0 : index
    %20 = vector.load %arg2[%c4, %c0_15] : memref<8x96xf32, #tpu.memory_space<vmem>>, vector<1x96xf32>
    %c5 = arith.constant 5 : index
    %c0_16 = arith.constant 0 : index
    %21 = vector.load %arg2[%c5, %c0_16] : memref<8x96xf32, #tpu.memory_space<vmem>>, vector<1x96xf32>
    %c6 = arith.constant 6 : index
    %c0_17 = arith.constant 0 : index
    %22 = vector.load %arg2[%c6, %c0_17] : memref<8x96xf32, #tpu.memory_space<vmem>>, vector<1x96xf32>
    %cst = arith.constant dense<0.000000e+00> : vector<8x96xf32>
    %23 = tpu.matmul %0, %2, %cst {dimension_numbers = #tpu.dot_dimension_numbers<[1], [0], [0], [1], [0, 0, 1, 1], [], []>} : vector<8x8xf32>, vector<8x96xf32>, vector<8x96xf32> -> vector<8x96xf32>
    %24 = arith.addf %23, %10 : vector<8x96xf32>
    %cst_18 = arith.constant dense<0.000000e+00> : vector<64x96xf32>
    %25 = tpu.matmul %1, %3, %cst_18 {dimension_numbers = #tpu.dot_dimension_numbers<[1], [0], [0], [1], [0, 0, 1, 1], [], []>} : vector<64x8xf32>, vector<8x96xf32>, vector<64x96xf32> -> vector<64x96xf32>
    %cst_19 = arith.constant 0.000000e+00 : f32
    %26 = vector.broadcast %cst_19 : f32 to vector<8x32xf32>
    %cst_20 = arith.constant 0.000000e+00 : f32
    %27 = vector.broadcast %cst_20 : f32 to vector<8x32xf32>
    %28 = vector.extract_strided_slice %25 {offsets = [0, 0], sizes = [8, 96], strides = [1, 1]} : vector<64x96xf32> to vector<8x96xf32>
    %29 = arith.addf %24, %28 : vector<8x96xf32>
    %cst_21 = arith.constant dense<0.000000e+00> : vector<8x96xf32>
    %30 = tpu.matmul %26, %4, %cst_21 {dimension_numbers = #tpu.dot_dimension_numbers<[1], [0], [0], [1], [0, 0, 1, 1], [], []>} : vector<8x32xf32>, vector<32x96xf32>, vector<8x96xf32> -> vector<8x96xf32>
    %31 = vector.extract_strided_slice %29 {offsets = [0, 0], sizes = [8, 64], strides = [1, 1]} : vector<8x96xf32> to vector<8x64xf32>
    %32 = vector.extract_strided_slice %30 {offsets = [0, 0], sizes = [8, 64], strides = [1, 1]} : vector<8x96xf32> to vector<8x64xf32>
    %33 = arith.addf %31, %32 : vector<8x64xf32>
    %34 = arith.negf %33 : vector<8x64xf32>
    %35 = math.exp %34 : vector<8x64xf32>
    %cst_22 = arith.constant 1.000000e+00 : f32
    %36 = vector.broadcast %cst_22 : f32 to vector<8x64xf32>
    %37 = arith.addf %36, %35 : vector<8x64xf32>
    %38 = arith.divf %36, %37 : vector<8x64xf32>
    %39 = vector.extract_strided_slice %38 {offsets = [0, 0], sizes = [8, 32], strides = [1, 1]} : vector<8x64xf32> to vector<8x32xf32>
    %40 = vector.extract_strided_slice %38 {offsets = [0, 32], sizes = [8, 32], strides = [1, 1]} : vector<8x64xf32> to vector<8x32xf32>
    %41 = vector.extract_strided_slice %29 {offsets = [0, 64], sizes = [8, 32], strides = [1, 1]} : vector<8x96xf32> to vector<8x32xf32>
    %42 = vector.extract_strided_slice %30 {offsets = [0, 64], sizes = [8, 32], strides = [1, 1]} : vector<8x96xf32> to vector<8x32xf32>
    %43 = arith.addf %42, %13 : vector<8x32xf32>
    %44 = arith.mulf %39, %43 : vector<8x32xf32>
    %45 = arith.addf %41, %44 : vector<8x32xf32>
    %46 = math.tanh %45 : vector<8x32xf32>
    %cst_23 = arith.constant 1.000000e+00 : f32
    %47 = vector.broadcast %cst_23 : f32 to vector<8x32xf32>
    %48 = arith.subf %47, %40 : vector<8x32xf32>
    %49 = arith.mulf %48, %46 : vector<8x32xf32>
    %50 = arith.mulf %40, %26 : vector<8x32xf32>
    %51 = arith.addf %49, %50 : vector<8x32xf32>
    %52 = vector.extract_strided_slice %25 {offsets = [8, 0], sizes = [8, 96], strides = [1, 1]} : vector<64x96xf32> to vector<8x96xf32>
    %53 = arith.addf %24, %52 : vector<8x96xf32>
    %cst_24 = arith.constant dense<0.000000e+00> : vector<8x96xf32>
    %54 = tpu.matmul %51, %4, %cst_24 {dimension_numbers = #tpu.dot_dimension_numbers<[1], [0], [0], [1], [0, 0, 1, 1], [], []>} : vector<8x32xf32>, vector<32x96xf32>, vector<8x96xf32> -> vector<8x96xf32>
    %55 = vector.extract_strided_slice %53 {offsets = [0, 0], sizes = [8, 64], strides = [1, 1]} : vector<8x96xf32> to vector<8x64xf32>
    %56 = vector.extract_strided_slice %54 {offsets = [0, 0], sizes = [8, 64], strides = [1, 1]} : vector<8x96xf32> to vector<8x64xf32>
    %57 = arith.addf %55, %56 : vector<8x64xf32>
    %58 = arith.negf %57 : vector<8x64xf32>
    %59 = math.exp %58 : vector<8x64xf32>
    %cst_25 = arith.constant 1.000000e+00 : f32
    %60 = vector.broadcast %cst_25 : f32 to vector<8x64xf32>
    %61 = arith.addf %60, %59 : vector<8x64xf32>
    %62 = arith.divf %60, %61 : vector<8x64xf32>
    %63 = vector.extract_strided_slice %62 {offsets = [0, 0], sizes = [8, 32], strides = [1, 1]} : vector<8x64xf32> to vector<8x32xf32>
    %64 = vector.extract_strided_slice %62 {offsets = [0, 32], sizes = [8, 32], strides = [1, 1]} : vector<8x64xf32> to vector<8x32xf32>
    %65 = vector.extract_strided_slice %53 {offsets = [0, 64], sizes = [8, 32], strides = [1, 1]} : vector<8x96xf32> to vector<8x32xf32>
    %66 = vector.extract_strided_slice %54 {offsets = [0, 64], sizes = [8, 32], strides = [1, 1]} : vector<8x96xf32> to vector<8x32xf32>
    %67 = arith.addf %66, %13 : vector<8x32xf32>
    %68 = arith.mulf %63, %67 : vector<8x32xf32>
    %69 = arith.addf %65, %68 : vector<8x32xf32>
    %70 = math.tanh %69 : vector<8x32xf32>
    %cst_26 = arith.constant 1.000000e+00 : f32
    %71 = vector.broadcast %cst_26 : f32 to vector<8x32xf32>
    %72 = arith.subf %71, %64 : vector<8x32xf32>
    %73 = arith.mulf %72, %70 : vector<8x32xf32>
    %74 = arith.mulf %64, %51 : vector<8x32xf32>
    %75 = arith.addf %73, %74 : vector<8x32xf32>
    %cst_27 = arith.constant dense<0.000000e+00> : vector<8x96xf32>
    %76 = tpu.matmul %51, %5, %cst_27 {dimension_numbers = #tpu.dot_dimension_numbers<[1], [0], [0], [1], [0, 0, 1, 1], [], []>} : vector<8x32xf32>, vector<32x96xf32>, vector<8x96xf32> -> vector<8x96xf32>
    %77 = arith.addf %76, %16 : vector<8x96xf32>
    %cst_28 = arith.constant dense<0.000000e+00> : vector<8x96xf32>
    %78 = tpu.matmul %27, %6, %cst_28 {dimension_numbers = #tpu.dot_dimension_numbers<[1], [0], [0], [1], [0, 0, 1, 1], [], []>} : vector<8x32xf32>, vector<32x96xf32>, vector<8x96xf32> -> vector<8x96xf32>
    %79 = vector.extract_strided_slice %77 {offsets = [0, 0], sizes = [8, 64], strides = [1, 1]} : vector<8x96xf32> to vector<8x64xf32>
    %80 = vector.extract_strided_slice %78 {offsets = [0, 0], sizes = [8, 64], strides = [1, 1]} : vector<8x96xf32> to vector<8x64xf32>
    %81 = arith.addf %79, %80 : vector<8x64xf32>
    %82 = arith.negf %81 : vector<8x64xf32>
    %83 = math.exp %82 : vector<8x64xf32>
    %cst_29 = arith.constant 1.000000e+00 : f32
    %84 = vector.broadcast %cst_29 : f32 to vector<8x64xf32>
    %85 = arith.addf %84, %83 : vector<8x64xf32>
    %86 = arith.divf %84, %85 : vector<8x64xf32>
    %87 = vector.extract_strided_slice %86 {offsets = [0, 0], sizes = [8, 32], strides = [1, 1]} : vector<8x64xf32> to vector<8x32xf32>
    %88 = vector.extract_strided_slice %86 {offsets = [0, 32], sizes = [8, 32], strides = [1, 1]} : vector<8x64xf32> to vector<8x32xf32>
    %89 = vector.extract_strided_slice %77 {offsets = [0, 64], sizes = [8, 32], strides = [1, 1]} : vector<8x96xf32> to vector<8x32xf32>
    %90 = vector.extract_strided_slice %78 {offsets = [0, 64], sizes = [8, 32], strides = [1, 1]} : vector<8x96xf32> to vector<8x32xf32>
    %91 = arith.addf %90, %19 : vector<8x32xf32>
    %92 = arith.mulf %87, %91 : vector<8x32xf32>
    %93 = arith.addf %89, %92 : vector<8x32xf32>
    %94 = math.tanh %93 : vector<8x32xf32>
    %cst_30 = arith.constant 1.000000e+00 : f32
    %95 = vector.broadcast %cst_30 : f32 to vector<8x32xf32>
    %96 = arith.subf %95, %88 : vector<8x32xf32>
    %97 = arith.mulf %96, %94 : vector<8x32xf32>
    %98 = arith.mulf %88, %27 : vector<8x32xf32>
    %99 = arith.addf %97, %98 : vector<8x32xf32>
    %100 = vector.extract_strided_slice %25 {offsets = [16, 0], sizes = [8, 96], strides = [1, 1]} : vector<64x96xf32> to vector<8x96xf32>
    %101 = arith.addf %24, %100 : vector<8x96xf32>
    %cst_31 = arith.constant dense<0.000000e+00> : vector<8x96xf32>
    %102 = tpu.matmul %75, %4, %cst_31 {dimension_numbers = #tpu.dot_dimension_numbers<[1], [0], [0], [1], [0, 0, 1, 1], [], []>} : vector<8x32xf32>, vector<32x96xf32>, vector<8x96xf32> -> vector<8x96xf32>
    %103 = vector.extract_strided_slice %101 {offsets = [0, 0], sizes = [8, 64], strides = [1, 1]} : vector<8x96xf32> to vector<8x64xf32>
    %104 = vector.extract_strided_slice %102 {offsets = [0, 0], sizes = [8, 64], strides = [1, 1]} : vector<8x96xf32> to vector<8x64xf32>
    %105 = arith.addf %103, %104 : vector<8x64xf32>
    %106 = arith.negf %105 : vector<8x64xf32>
    %107 = math.exp %106 : vector<8x64xf32>
    %cst_32 = arith.constant 1.000000e+00 : f32
    %108 = vector.broadcast %cst_32 : f32 to vector<8x64xf32>
    %109 = arith.addf %108, %107 : vector<8x64xf32>
    %110 = arith.divf %108, %109 : vector<8x64xf32>
    %111 = vector.extract_strided_slice %110 {offsets = [0, 0], sizes = [8, 32], strides = [1, 1]} : vector<8x64xf32> to vector<8x32xf32>
    %112 = vector.extract_strided_slice %110 {offsets = [0, 32], sizes = [8, 32], strides = [1, 1]} : vector<8x64xf32> to vector<8x32xf32>
    %113 = vector.extract_strided_slice %101 {offsets = [0, 64], sizes = [8, 32], strides = [1, 1]} : vector<8x96xf32> to vector<8x32xf32>
    %114 = vector.extract_strided_slice %102 {offsets = [0, 64], sizes = [8, 32], strides = [1, 1]} : vector<8x96xf32> to vector<8x32xf32>
    %115 = arith.addf %114, %13 : vector<8x32xf32>
    %116 = arith.mulf %111, %115 : vector<8x32xf32>
    %117 = arith.addf %113, %116 : vector<8x32xf32>
    %118 = math.tanh %117 : vector<8x32xf32>
    %cst_33 = arith.constant 1.000000e+00 : f32
    %119 = vector.broadcast %cst_33 : f32 to vector<8x32xf32>
    %120 = arith.subf %119, %112 : vector<8x32xf32>
    %121 = arith.mulf %120, %118 : vector<8x32xf32>
    %122 = arith.mulf %112, %75 : vector<8x32xf32>
    %123 = arith.addf %121, %122 : vector<8x32xf32>
    %cst_34 = arith.constant dense<0.000000e+00> : vector<8x96xf32>
    %124 = tpu.matmul %75, %5, %cst_34 {dimension_numbers = #tpu.dot_dimension_numbers<[1], [0], [0], [1], [0, 0, 1, 1], [], []>} : vector<8x32xf32>, vector<32x96xf32>, vector<8x96xf32> -> vector<8x96xf32>
    %125 = arith.addf %124, %16 : vector<8x96xf32>
    %cst_35 = arith.constant dense<0.000000e+00> : vector<8x96xf32>
    %126 = tpu.matmul %99, %6, %cst_35 {dimension_numbers = #tpu.dot_dimension_numbers<[1], [0], [0], [1], [0, 0, 1, 1], [], []>} : vector<8x32xf32>, vector<32x96xf32>, vector<8x96xf32> -> vector<8x96xf32>
    %127 = vector.extract_strided_slice %125 {offsets = [0, 0], sizes = [8, 64], strides = [1, 1]} : vector<8x96xf32> to vector<8x64xf32>
    %128 = vector.extract_strided_slice %126 {offsets = [0, 0], sizes = [8, 64], strides = [1, 1]} : vector<8x96xf32> to vector<8x64xf32>
    %129 = arith.addf %127, %128 : vector<8x64xf32>
    %130 = arith.negf %129 : vector<8x64xf32>
    %131 = math.exp %130 : vector<8x64xf32>
    %cst_36 = arith.constant 1.000000e+00 : f32
    %132 = vector.broadcast %cst_36 : f32 to vector<8x64xf32>
    %133 = arith.addf %132, %131 : vector<8x64xf32>
    %134 = arith.divf %132, %133 : vector<8x64xf32>
    %135 = vector.extract_strided_slice %134 {offsets = [0, 0], sizes = [8, 32], strides = [1, 1]} : vector<8x64xf32> to vector<8x32xf32>
    %136 = vector.extract_strided_slice %134 {offsets = [0, 32], sizes = [8, 32], strides = [1, 1]} : vector<8x64xf32> to vector<8x32xf32>
    %137 = vector.extract_strided_slice %125 {offsets = [0, 64], sizes = [8, 32], strides = [1, 1]} : vector<8x96xf32> to vector<8x32xf32>
    %138 = vector.extract_strided_slice %126 {offsets = [0, 64], sizes = [8, 32], strides = [1, 1]} : vector<8x96xf32> to vector<8x32xf32>
    %139 = arith.addf %138, %19 : vector<8x32xf32>
    %140 = arith.mulf %135, %139 : vector<8x32xf32>
    %141 = arith.addf %137, %140 : vector<8x32xf32>
    %142 = math.tanh %141 : vector<8x32xf32>
    %cst_37 = arith.constant 1.000000e+00 : f32
    %143 = vector.broadcast %cst_37 : f32 to vector<8x32xf32>
    %144 = arith.subf %143, %136 : vector<8x32xf32>
    %145 = arith.mulf %144, %142 : vector<8x32xf32>
    %146 = arith.mulf %136, %99 : vector<8x32xf32>
    %147 = arith.addf %145, %146 : vector<8x32xf32>
    %148 = vector.extract_strided_slice %25 {offsets = [24, 0], sizes = [8, 96], strides = [1, 1]} : vector<64x96xf32> to vector<8x96xf32>
    %149 = arith.addf %24, %148 : vector<8x96xf32>
    %cst_38 = arith.constant dense<0.000000e+00> : vector<8x96xf32>
    %150 = tpu.matmul %123, %4, %cst_38 {dimension_numbers = #tpu.dot_dimension_numbers<[1], [0], [0], [1], [0, 0, 1, 1], [], []>} : vector<8x32xf32>, vector<32x96xf32>, vector<8x96xf32> -> vector<8x96xf32>
    %151 = vector.extract_strided_slice %149 {offsets = [0, 0], sizes = [8, 64], strides = [1, 1]} : vector<8x96xf32> to vector<8x64xf32>
    %152 = vector.extract_strided_slice %150 {offsets = [0, 0], sizes = [8, 64], strides = [1, 1]} : vector<8x96xf32> to vector<8x64xf32>
    %153 = arith.addf %151, %152 : vector<8x64xf32>
    %154 = arith.negf %153 : vector<8x64xf32>
    %155 = math.exp %154 : vector<8x64xf32>
    %cst_39 = arith.constant 1.000000e+00 : f32
    %156 = vector.broadcast %cst_39 : f32 to vector<8x64xf32>
    %157 = arith.addf %156, %155 : vector<8x64xf32>
    %158 = arith.divf %156, %157 : vector<8x64xf32>
    %159 = vector.extract_strided_slice %158 {offsets = [0, 0], sizes = [8, 32], strides = [1, 1]} : vector<8x64xf32> to vector<8x32xf32>
    %160 = vector.extract_strided_slice %158 {offsets = [0, 32], sizes = [8, 32], strides = [1, 1]} : vector<8x64xf32> to vector<8x32xf32>
    %161 = vector.extract_strided_slice %149 {offsets = [0, 64], sizes = [8, 32], strides = [1, 1]} : vector<8x96xf32> to vector<8x32xf32>
    %162 = vector.extract_strided_slice %150 {offsets = [0, 64], sizes = [8, 32], strides = [1, 1]} : vector<8x96xf32> to vector<8x32xf32>
    %163 = arith.addf %162, %13 : vector<8x32xf32>
    %164 = arith.mulf %159, %163 : vector<8x32xf32>
    %165 = arith.addf %161, %164 : vector<8x32xf32>
    %166 = math.tanh %165 : vector<8x32xf32>
    %cst_40 = arith.constant 1.000000e+00 : f32
    %167 = vector.broadcast %cst_40 : f32 to vector<8x32xf32>
    %168 = arith.subf %167, %160 : vector<8x32xf32>
    %169 = arith.mulf %168, %166 : vector<8x32xf32>
    %170 = arith.mulf %160, %123 : vector<8x32xf32>
    %171 = arith.addf %169, %170 : vector<8x32xf32>
    %cst_41 = arith.constant dense<0.000000e+00> : vector<8x96xf32>
    %172 = tpu.matmul %123, %5, %cst_41 {dimension_numbers = #tpu.dot_dimension_numbers<[1], [0], [0], [1], [0, 0, 1, 1], [], []>} : vector<8x32xf32>, vector<32x96xf32>, vector<8x96xf32> -> vector<8x96xf32>
    %173 = arith.addf %172, %16 : vector<8x96xf32>
    %cst_42 = arith.constant dense<0.000000e+00> : vector<8x96xf32>
    %174 = tpu.matmul %147, %6, %cst_42 {dimension_numbers = #tpu.dot_dimension_numbers<[1], [0], [0], [1], [0, 0, 1, 1], [], []>} : vector<8x32xf32>, vector<32x96xf32>, vector<8x96xf32> -> vector<8x96xf32>
    %175 = vector.extract_strided_slice %173 {offsets = [0, 0], sizes = [8, 64], strides = [1, 1]} : vector<8x96xf32> to vector<8x64xf32>
    %176 = vector.extract_strided_slice %174 {offsets = [0, 0], sizes = [8, 64], strides = [1, 1]} : vector<8x96xf32> to vector<8x64xf32>
    %177 = arith.addf %175, %176 : vector<8x64xf32>
    %178 = arith.negf %177 : vector<8x64xf32>
    %179 = math.exp %178 : vector<8x64xf32>
    %cst_43 = arith.constant 1.000000e+00 : f32
    %180 = vector.broadcast %cst_43 : f32 to vector<8x64xf32>
    %181 = arith.addf %180, %179 : vector<8x64xf32>
    %182 = arith.divf %180, %181 : vector<8x64xf32>
    %183 = vector.extract_strided_slice %182 {offsets = [0, 0], sizes = [8, 32], strides = [1, 1]} : vector<8x64xf32> to vector<8x32xf32>
    %184 = vector.extract_strided_slice %182 {offsets = [0, 32], sizes = [8, 32], strides = [1, 1]} : vector<8x64xf32> to vector<8x32xf32>
    %185 = vector.extract_strided_slice %173 {offsets = [0, 64], sizes = [8, 32], strides = [1, 1]} : vector<8x96xf32> to vector<8x32xf32>
    %186 = vector.extract_strided_slice %174 {offsets = [0, 64], sizes = [8, 32], strides = [1, 1]} : vector<8x96xf32> to vector<8x32xf32>
    %187 = arith.addf %186, %19 : vector<8x32xf32>
    %188 = arith.mulf %183, %187 : vector<8x32xf32>
    %189 = arith.addf %185, %188 : vector<8x32xf32>
    %190 = math.tanh %189 : vector<8x32xf32>
    %cst_44 = arith.constant 1.000000e+00 : f32
    %191 = vector.broadcast %cst_44 : f32 to vector<8x32xf32>
    %192 = arith.subf %191, %184 : vector<8x32xf32>
    %193 = arith.mulf %192, %190 : vector<8x32xf32>
    %194 = arith.mulf %184, %147 : vector<8x32xf32>
    %195 = arith.addf %193, %194 : vector<8x32xf32>
    %196 = vector.extract_strided_slice %25 {offsets = [32, 0], sizes = [8, 96], strides = [1, 1]} : vector<64x96xf32> to vector<8x96xf32>
    %197 = arith.addf %24, %196 : vector<8x96xf32>
    %cst_45 = arith.constant dense<0.000000e+00> : vector<8x96xf32>
    %198 = tpu.matmul %171, %4, %cst_45 {dimension_numbers = #tpu.dot_dimension_numbers<[1], [0], [0], [1], [0, 0, 1, 1], [], []>} : vector<8x32xf32>, vector<32x96xf32>, vector<8x96xf32> -> vector<8x96xf32>
    %199 = vector.extract_strided_slice %197 {offsets = [0, 0], sizes = [8, 64], strides = [1, 1]} : vector<8x96xf32> to vector<8x64xf32>
    %200 = vector.extract_strided_slice %198 {offsets = [0, 0], sizes = [8, 64], strides = [1, 1]} : vector<8x96xf32> to vector<8x64xf32>
    %201 = arith.addf %199, %200 : vector<8x64xf32>
    %202 = arith.negf %201 : vector<8x64xf32>
    %203 = math.exp %202 : vector<8x64xf32>
    %cst_46 = arith.constant 1.000000e+00 : f32
    %204 = vector.broadcast %cst_46 : f32 to vector<8x64xf32>
    %205 = arith.addf %204, %203 : vector<8x64xf32>
    %206 = arith.divf %204, %205 : vector<8x64xf32>
    %207 = vector.extract_strided_slice %206 {offsets = [0, 0], sizes = [8, 32], strides = [1, 1]} : vector<8x64xf32> to vector<8x32xf32>
    %208 = vector.extract_strided_slice %206 {offsets = [0, 32], sizes = [8, 32], strides = [1, 1]} : vector<8x64xf32> to vector<8x32xf32>
    %209 = vector.extract_strided_slice %197 {offsets = [0, 64], sizes = [8, 32], strides = [1, 1]} : vector<8x96xf32> to vector<8x32xf32>
    %210 = vector.extract_strided_slice %198 {offsets = [0, 64], sizes = [8, 32], strides = [1, 1]} : vector<8x96xf32> to vector<8x32xf32>
    %211 = arith.addf %210, %13 : vector<8x32xf32>
    %212 = arith.mulf %207, %211 : vector<8x32xf32>
    %213 = arith.addf %209, %212 : vector<8x32xf32>
    %214 = math.tanh %213 : vector<8x32xf32>
    %cst_47 = arith.constant 1.000000e+00 : f32
    %215 = vector.broadcast %cst_47 : f32 to vector<8x32xf32>
    %216 = arith.subf %215, %208 : vector<8x32xf32>
    %217 = arith.mulf %216, %214 : vector<8x32xf32>
    %218 = arith.mulf %208, %171 : vector<8x32xf32>
    %219 = arith.addf %217, %218 : vector<8x32xf32>
    %cst_48 = arith.constant dense<0.000000e+00> : vector<8x96xf32>
    %220 = tpu.matmul %171, %5, %cst_48 {dimension_numbers = #tpu.dot_dimension_numbers<[1], [0], [0], [1], [0, 0, 1, 1], [], []>} : vector<8x32xf32>, vector<32x96xf32>, vector<8x96xf32> -> vector<8x96xf32>
    %221 = arith.addf %220, %16 : vector<8x96xf32>
    %cst_49 = arith.constant dense<0.000000e+00> : vector<8x96xf32>
    %222 = tpu.matmul %195, %6, %cst_49 {dimension_numbers = #tpu.dot_dimension_numbers<[1], [0], [0], [1], [0, 0, 1, 1], [], []>} : vector<8x32xf32>, vector<32x96xf32>, vector<8x96xf32> -> vector<8x96xf32>
    %223 = vector.extract_strided_slice %221 {offsets = [0, 0], sizes = [8, 64], strides = [1, 1]} : vector<8x96xf32> to vector<8x64xf32>
    %224 = vector.extract_strided_slice %222 {offsets = [0, 0], sizes = [8, 64], strides = [1, 1]} : vector<8x96xf32> to vector<8x64xf32>
    %225 = arith.addf %223, %224 : vector<8x64xf32>
    %226 = arith.negf %225 : vector<8x64xf32>
    %227 = math.exp %226 : vector<8x64xf32>
    %cst_50 = arith.constant 1.000000e+00 : f32
    %228 = vector.broadcast %cst_50 : f32 to vector<8x64xf32>
    %229 = arith.addf %228, %227 : vector<8x64xf32>
    %230 = arith.divf %228, %229 : vector<8x64xf32>
    %231 = vector.extract_strided_slice %230 {offsets = [0, 0], sizes = [8, 32], strides = [1, 1]} : vector<8x64xf32> to vector<8x32xf32>
    %232 = vector.extract_strided_slice %230 {offsets = [0, 32], sizes = [8, 32], strides = [1, 1]} : vector<8x64xf32> to vector<8x32xf32>
    %233 = vector.extract_strided_slice %221 {offsets = [0, 64], sizes = [8, 32], strides = [1, 1]} : vector<8x96xf32> to vector<8x32xf32>
    %234 = vector.extract_strided_slice %222 {offsets = [0, 64], sizes = [8, 32], strides = [1, 1]} : vector<8x96xf32> to vector<8x32xf32>
    %235 = arith.addf %234, %19 : vector<8x32xf32>
    %236 = arith.mulf %231, %235 : vector<8x32xf32>
    %237 = arith.addf %233, %236 : vector<8x32xf32>
    %238 = math.tanh %237 : vector<8x32xf32>
    %cst_51 = arith.constant 1.000000e+00 : f32
    %239 = vector.broadcast %cst_51 : f32 to vector<8x32xf32>
    %240 = arith.subf %239, %232 : vector<8x32xf32>
    %241 = arith.mulf %240, %238 : vector<8x32xf32>
    %242 = arith.mulf %232, %195 : vector<8x32xf32>
    %243 = arith.addf %241, %242 : vector<8x32xf32>
    %244 = vector.extract_strided_slice %25 {offsets = [40, 0], sizes = [8, 96], strides = [1, 1]} : vector<64x96xf32> to vector<8x96xf32>
    %245 = arith.addf %24, %244 : vector<8x96xf32>
    %cst_52 = arith.constant dense<0.000000e+00> : vector<8x96xf32>
    %246 = tpu.matmul %219, %4, %cst_52 {dimension_numbers = #tpu.dot_dimension_numbers<[1], [0], [0], [1], [0, 0, 1, 1], [], []>} : vector<8x32xf32>, vector<32x96xf32>, vector<8x96xf32> -> vector<8x96xf32>
    %247 = vector.extract_strided_slice %245 {offsets = [0, 0], sizes = [8, 64], strides = [1, 1]} : vector<8x96xf32> to vector<8x64xf32>
    %248 = vector.extract_strided_slice %246 {offsets = [0, 0], sizes = [8, 64], strides = [1, 1]} : vector<8x96xf32> to vector<8x64xf32>
    %249 = arith.addf %247, %248 : vector<8x64xf32>
    %250 = arith.negf %249 : vector<8x64xf32>
    %251 = math.exp %250 : vector<8x64xf32>
    %cst_53 = arith.constant 1.000000e+00 : f32
    %252 = vector.broadcast %cst_53 : f32 to vector<8x64xf32>
    %253 = arith.addf %252, %251 : vector<8x64xf32>
    %254 = arith.divf %252, %253 : vector<8x64xf32>
    %255 = vector.extract_strided_slice %254 {offsets = [0, 0], sizes = [8, 32], strides = [1, 1]} : vector<8x64xf32> to vector<8x32xf32>
    %256 = vector.extract_strided_slice %254 {offsets = [0, 32], sizes = [8, 32], strides = [1, 1]} : vector<8x64xf32> to vector<8x32xf32>
    %257 = vector.extract_strided_slice %245 {offsets = [0, 64], sizes = [8, 32], strides = [1, 1]} : vector<8x96xf32> to vector<8x32xf32>
    %258 = vector.extract_strided_slice %246 {offsets = [0, 64], sizes = [8, 32], strides = [1, 1]} : vector<8x96xf32> to vector<8x32xf32>
    %259 = arith.addf %258, %13 : vector<8x32xf32>
    %260 = arith.mulf %255, %259 : vector<8x32xf32>
    %261 = arith.addf %257, %260 : vector<8x32xf32>
    %262 = math.tanh %261 : vector<8x32xf32>
    %cst_54 = arith.constant 1.000000e+00 : f32
    %263 = vector.broadcast %cst_54 : f32 to vector<8x32xf32>
    %264 = arith.subf %263, %256 : vector<8x32xf32>
    %265 = arith.mulf %264, %262 : vector<8x32xf32>
    %266 = arith.mulf %256, %219 : vector<8x32xf32>
    %267 = arith.addf %265, %266 : vector<8x32xf32>
    %cst_55 = arith.constant dense<0.000000e+00> : vector<8x96xf32>
    %268 = tpu.matmul %219, %5, %cst_55 {dimension_numbers = #tpu.dot_dimension_numbers<[1], [0], [0], [1], [0, 0, 1, 1], [], []>} : vector<8x32xf32>, vector<32x96xf32>, vector<8x96xf32> -> vector<8x96xf32>
    %269 = arith.addf %268, %16 : vector<8x96xf32>
    %cst_56 = arith.constant dense<0.000000e+00> : vector<8x96xf32>
    %270 = tpu.matmul %243, %6, %cst_56 {dimension_numbers = #tpu.dot_dimension_numbers<[1], [0], [0], [1], [0, 0, 1, 1], [], []>} : vector<8x32xf32>, vector<32x96xf32>, vector<8x96xf32> -> vector<8x96xf32>
    %271 = vector.extract_strided_slice %269 {offsets = [0, 0], sizes = [8, 64], strides = [1, 1]} : vector<8x96xf32> to vector<8x64xf32>
    %272 = vector.extract_strided_slice %270 {offsets = [0, 0], sizes = [8, 64], strides = [1, 1]} : vector<8x96xf32> to vector<8x64xf32>
    %273 = arith.addf %271, %272 : vector<8x64xf32>
    %274 = arith.negf %273 : vector<8x64xf32>
    %275 = math.exp %274 : vector<8x64xf32>
    %cst_57 = arith.constant 1.000000e+00 : f32
    %276 = vector.broadcast %cst_57 : f32 to vector<8x64xf32>
    %277 = arith.addf %276, %275 : vector<8x64xf32>
    %278 = arith.divf %276, %277 : vector<8x64xf32>
    %279 = vector.extract_strided_slice %278 {offsets = [0, 0], sizes = [8, 32], strides = [1, 1]} : vector<8x64xf32> to vector<8x32xf32>
    %280 = vector.extract_strided_slice %278 {offsets = [0, 32], sizes = [8, 32], strides = [1, 1]} : vector<8x64xf32> to vector<8x32xf32>
    %281 = vector.extract_strided_slice %269 {offsets = [0, 64], sizes = [8, 32], strides = [1, 1]} : vector<8x96xf32> to vector<8x32xf32>
    %282 = vector.extract_strided_slice %270 {offsets = [0, 64], sizes = [8, 32], strides = [1, 1]} : vector<8x96xf32> to vector<8x32xf32>
    %283 = arith.addf %282, %19 : vector<8x32xf32>
    %284 = arith.mulf %279, %283 : vector<8x32xf32>
    %285 = arith.addf %281, %284 : vector<8x32xf32>
    %286 = math.tanh %285 : vector<8x32xf32>
    %cst_58 = arith.constant 1.000000e+00 : f32
    %287 = vector.broadcast %cst_58 : f32 to vector<8x32xf32>
    %288 = arith.subf %287, %280 : vector<8x32xf32>
    %289 = arith.mulf %288, %286 : vector<8x32xf32>
    %290 = arith.mulf %280, %243 : vector<8x32xf32>
    %291 = arith.addf %289, %290 : vector<8x32xf32>
    %292 = vector.extract_strided_slice %25 {offsets = [48, 0], sizes = [8, 96], strides = [1, 1]} : vector<64x96xf32> to vector<8x96xf32>
    %293 = arith.addf %24, %292 : vector<8x96xf32>
    %cst_59 = arith.constant dense<0.000000e+00> : vector<8x96xf32>
    %294 = tpu.matmul %267, %4, %cst_59 {dimension_numbers = #tpu.dot_dimension_numbers<[1], [0], [0], [1], [0, 0, 1, 1], [], []>} : vector<8x32xf32>, vector<32x96xf32>, vector<8x96xf32> -> vector<8x96xf32>
    %295 = vector.extract_strided_slice %293 {offsets = [0, 0], sizes = [8, 64], strides = [1, 1]} : vector<8x96xf32> to vector<8x64xf32>
    %296 = vector.extract_strided_slice %294 {offsets = [0, 0], sizes = [8, 64], strides = [1, 1]} : vector<8x96xf32> to vector<8x64xf32>
    %297 = arith.addf %295, %296 : vector<8x64xf32>
    %298 = arith.negf %297 : vector<8x64xf32>
    %299 = math.exp %298 : vector<8x64xf32>
    %cst_60 = arith.constant 1.000000e+00 : f32
    %300 = vector.broadcast %cst_60 : f32 to vector<8x64xf32>
    %301 = arith.addf %300, %299 : vector<8x64xf32>
    %302 = arith.divf %300, %301 : vector<8x64xf32>
    %303 = vector.extract_strided_slice %302 {offsets = [0, 0], sizes = [8, 32], strides = [1, 1]} : vector<8x64xf32> to vector<8x32xf32>
    %304 = vector.extract_strided_slice %302 {offsets = [0, 32], sizes = [8, 32], strides = [1, 1]} : vector<8x64xf32> to vector<8x32xf32>
    %305 = vector.extract_strided_slice %293 {offsets = [0, 64], sizes = [8, 32], strides = [1, 1]} : vector<8x96xf32> to vector<8x32xf32>
    %306 = vector.extract_strided_slice %294 {offsets = [0, 64], sizes = [8, 32], strides = [1, 1]} : vector<8x96xf32> to vector<8x32xf32>
    %307 = arith.addf %306, %13 : vector<8x32xf32>
    %308 = arith.mulf %303, %307 : vector<8x32xf32>
    %309 = arith.addf %305, %308 : vector<8x32xf32>
    %310 = math.tanh %309 : vector<8x32xf32>
    %cst_61 = arith.constant 1.000000e+00 : f32
    %311 = vector.broadcast %cst_61 : f32 to vector<8x32xf32>
    %312 = arith.subf %311, %304 : vector<8x32xf32>
    %313 = arith.mulf %312, %310 : vector<8x32xf32>
    %314 = arith.mulf %304, %267 : vector<8x32xf32>
    %315 = arith.addf %313, %314 : vector<8x32xf32>
    %cst_62 = arith.constant dense<0.000000e+00> : vector<8x96xf32>
    %316 = tpu.matmul %267, %5, %cst_62 {dimension_numbers = #tpu.dot_dimension_numbers<[1], [0], [0], [1], [0, 0, 1, 1], [], []>} : vector<8x32xf32>, vector<32x96xf32>, vector<8x96xf32> -> vector<8x96xf32>
    %317 = arith.addf %316, %16 : vector<8x96xf32>
    %cst_63 = arith.constant dense<0.000000e+00> : vector<8x96xf32>
    %318 = tpu.matmul %291, %6, %cst_63 {dimension_numbers = #tpu.dot_dimension_numbers<[1], [0], [0], [1], [0, 0, 1, 1], [], []>} : vector<8x32xf32>, vector<32x96xf32>, vector<8x96xf32> -> vector<8x96xf32>
    %319 = vector.extract_strided_slice %317 {offsets = [0, 0], sizes = [8, 64], strides = [1, 1]} : vector<8x96xf32> to vector<8x64xf32>
    %320 = vector.extract_strided_slice %318 {offsets = [0, 0], sizes = [8, 64], strides = [1, 1]} : vector<8x96xf32> to vector<8x64xf32>
    %321 = arith.addf %319, %320 : vector<8x64xf32>
    %322 = arith.negf %321 : vector<8x64xf32>
    %323 = math.exp %322 : vector<8x64xf32>
    %cst_64 = arith.constant 1.000000e+00 : f32
    %324 = vector.broadcast %cst_64 : f32 to vector<8x64xf32>
    %325 = arith.addf %324, %323 : vector<8x64xf32>
    %326 = arith.divf %324, %325 : vector<8x64xf32>
    %327 = vector.extract_strided_slice %326 {offsets = [0, 0], sizes = [8, 32], strides = [1, 1]} : vector<8x64xf32> to vector<8x32xf32>
    %328 = vector.extract_strided_slice %326 {offsets = [0, 32], sizes = [8, 32], strides = [1, 1]} : vector<8x64xf32> to vector<8x32xf32>
    %329 = vector.extract_strided_slice %317 {offsets = [0, 64], sizes = [8, 32], strides = [1, 1]} : vector<8x96xf32> to vector<8x32xf32>
    %330 = vector.extract_strided_slice %318 {offsets = [0, 64], sizes = [8, 32], strides = [1, 1]} : vector<8x96xf32> to vector<8x32xf32>
    %331 = arith.addf %330, %19 : vector<8x32xf32>
    %332 = arith.mulf %327, %331 : vector<8x32xf32>
    %333 = arith.addf %329, %332 : vector<8x32xf32>
    %334 = math.tanh %333 : vector<8x32xf32>
    %cst_65 = arith.constant 1.000000e+00 : f32
    %335 = vector.broadcast %cst_65 : f32 to vector<8x32xf32>
    %336 = arith.subf %335, %328 : vector<8x32xf32>
    %337 = arith.mulf %336, %334 : vector<8x32xf32>
    %338 = arith.mulf %328, %291 : vector<8x32xf32>
    %339 = arith.addf %337, %338 : vector<8x32xf32>
    %340 = vector.extract_strided_slice %25 {offsets = [56, 0], sizes = [8, 96], strides = [1, 1]} : vector<64x96xf32> to vector<8x96xf32>
    %341 = arith.addf %24, %340 : vector<8x96xf32>
    %cst_66 = arith.constant dense<0.000000e+00> : vector<8x96xf32>
    %342 = tpu.matmul %315, %4, %cst_66 {dimension_numbers = #tpu.dot_dimension_numbers<[1], [0], [0], [1], [0, 0, 1, 1], [], []>} : vector<8x32xf32>, vector<32x96xf32>, vector<8x96xf32> -> vector<8x96xf32>
    %343 = vector.extract_strided_slice %341 {offsets = [0, 0], sizes = [8, 64], strides = [1, 1]} : vector<8x96xf32> to vector<8x64xf32>
    %344 = vector.extract_strided_slice %342 {offsets = [0, 0], sizes = [8, 64], strides = [1, 1]} : vector<8x96xf32> to vector<8x64xf32>
    %345 = arith.addf %343, %344 : vector<8x64xf32>
    %346 = arith.negf %345 : vector<8x64xf32>
    %347 = math.exp %346 : vector<8x64xf32>
    %cst_67 = arith.constant 1.000000e+00 : f32
    %348 = vector.broadcast %cst_67 : f32 to vector<8x64xf32>
    %349 = arith.addf %348, %347 : vector<8x64xf32>
    %350 = arith.divf %348, %349 : vector<8x64xf32>
    %351 = vector.extract_strided_slice %350 {offsets = [0, 0], sizes = [8, 32], strides = [1, 1]} : vector<8x64xf32> to vector<8x32xf32>
    %352 = vector.extract_strided_slice %350 {offsets = [0, 32], sizes = [8, 32], strides = [1, 1]} : vector<8x64xf32> to vector<8x32xf32>
    %353 = vector.extract_strided_slice %341 {offsets = [0, 64], sizes = [8, 32], strides = [1, 1]} : vector<8x96xf32> to vector<8x32xf32>
    %354 = vector.extract_strided_slice %342 {offsets = [0, 64], sizes = [8, 32], strides = [1, 1]} : vector<8x96xf32> to vector<8x32xf32>
    %355 = arith.addf %354, %13 : vector<8x32xf32>
    %356 = arith.mulf %351, %355 : vector<8x32xf32>
    %357 = arith.addf %353, %356 : vector<8x32xf32>
    %358 = math.tanh %357 : vector<8x32xf32>
    %cst_68 = arith.constant 1.000000e+00 : f32
    %359 = vector.broadcast %cst_68 : f32 to vector<8x32xf32>
    %360 = arith.subf %359, %352 : vector<8x32xf32>
    %361 = arith.mulf %360, %358 : vector<8x32xf32>
    %362 = arith.mulf %352, %315 : vector<8x32xf32>
    %363 = arith.addf %361, %362 : vector<8x32xf32>
    %cst_69 = arith.constant dense<0.000000e+00> : vector<8x96xf32>
    %364 = tpu.matmul %315, %5, %cst_69 {dimension_numbers = #tpu.dot_dimension_numbers<[1], [0], [0], [1], [0, 0, 1, 1], [], []>} : vector<8x32xf32>, vector<32x96xf32>, vector<8x96xf32> -> vector<8x96xf32>
    %365 = arith.addf %364, %16 : vector<8x96xf32>
    %cst_70 = arith.constant dense<0.000000e+00> : vector<8x96xf32>
    %366 = tpu.matmul %339, %6, %cst_70 {dimension_numbers = #tpu.dot_dimension_numbers<[1], [0], [0], [1], [0, 0, 1, 1], [], []>} : vector<8x32xf32>, vector<32x96xf32>, vector<8x96xf32> -> vector<8x96xf32>
    %367 = vector.extract_strided_slice %365 {offsets = [0, 0], sizes = [8, 64], strides = [1, 1]} : vector<8x96xf32> to vector<8x64xf32>
    %368 = vector.extract_strided_slice %366 {offsets = [0, 0], sizes = [8, 64], strides = [1, 1]} : vector<8x96xf32> to vector<8x64xf32>
    %369 = arith.addf %367, %368 : vector<8x64xf32>
    %370 = arith.negf %369 : vector<8x64xf32>
    %371 = math.exp %370 : vector<8x64xf32>
    %cst_71 = arith.constant 1.000000e+00 : f32
    %372 = vector.broadcast %cst_71 : f32 to vector<8x64xf32>
    %373 = arith.addf %372, %371 : vector<8x64xf32>
    %374 = arith.divf %372, %373 : vector<8x64xf32>
    %375 = vector.extract_strided_slice %374 {offsets = [0, 0], sizes = [8, 32], strides = [1, 1]} : vector<8x64xf32> to vector<8x32xf32>
    %376 = vector.extract_strided_slice %374 {offsets = [0, 32], sizes = [8, 32], strides = [1, 1]} : vector<8x64xf32> to vector<8x32xf32>
    %377 = vector.extract_strided_slice %365 {offsets = [0, 64], sizes = [8, 32], strides = [1, 1]} : vector<8x96xf32> to vector<8x32xf32>
    %378 = vector.extract_strided_slice %366 {offsets = [0, 64], sizes = [8, 32], strides = [1, 1]} : vector<8x96xf32> to vector<8x32xf32>
    %379 = arith.addf %378, %19 : vector<8x32xf32>
    %380 = arith.mulf %375, %379 : vector<8x32xf32>
    %381 = arith.addf %377, %380 : vector<8x32xf32>
    %382 = math.tanh %381 : vector<8x32xf32>
    %cst_72 = arith.constant 1.000000e+00 : f32
    %383 = vector.broadcast %cst_72 : f32 to vector<8x32xf32>
    %384 = arith.subf %383, %376 : vector<8x32xf32>
    %385 = arith.mulf %384, %382 : vector<8x32xf32>
    %386 = arith.mulf %376, %339 : vector<8x32xf32>
    %387 = arith.addf %385, %386 : vector<8x32xf32>
    %cst_73 = arith.constant dense<0.000000e+00> : vector<8x96xf32>
    %388 = tpu.matmul %363, %5, %cst_73 {dimension_numbers = #tpu.dot_dimension_numbers<[1], [0], [0], [1], [0, 0, 1, 1], [], []>} : vector<8x32xf32>, vector<32x96xf32>, vector<8x96xf32> -> vector<8x96xf32>
    %389 = arith.addf %388, %16 : vector<8x96xf32>
    %cst_74 = arith.constant dense<0.000000e+00> : vector<8x96xf32>
    %390 = tpu.matmul %387, %6, %cst_74 {dimension_numbers = #tpu.dot_dimension_numbers<[1], [0], [0], [1], [0, 0, 1, 1], [], []>} : vector<8x32xf32>, vector<32x96xf32>, vector<8x96xf32> -> vector<8x96xf32>
    %391 = vector.extract_strided_slice %389 {offsets = [0, 0], sizes = [8, 64], strides = [1, 1]} : vector<8x96xf32> to vector<8x64xf32>
    %392 = vector.extract_strided_slice %390 {offsets = [0, 0], sizes = [8, 64], strides = [1, 1]} : vector<8x96xf32> to vector<8x64xf32>
    %393 = arith.addf %391, %392 : vector<8x64xf32>
    %394 = arith.negf %393 : vector<8x64xf32>
    %395 = math.exp %394 : vector<8x64xf32>
    %cst_75 = arith.constant 1.000000e+00 : f32
    %396 = vector.broadcast %cst_75 : f32 to vector<8x64xf32>
    %397 = arith.addf %396, %395 : vector<8x64xf32>
    %398 = arith.divf %396, %397 : vector<8x64xf32>
    %399 = vector.extract_strided_slice %398 {offsets = [0, 0], sizes = [8, 32], strides = [1, 1]} : vector<8x64xf32> to vector<8x32xf32>
    %400 = vector.extract_strided_slice %398 {offsets = [0, 32], sizes = [8, 32], strides = [1, 1]} : vector<8x64xf32> to vector<8x32xf32>
    %401 = vector.extract_strided_slice %389 {offsets = [0, 64], sizes = [8, 32], strides = [1, 1]} : vector<8x96xf32> to vector<8x32xf32>
    %402 = vector.extract_strided_slice %390 {offsets = [0, 64], sizes = [8, 32], strides = [1, 1]} : vector<8x96xf32> to vector<8x32xf32>
    %403 = arith.addf %402, %19 : vector<8x32xf32>
    %404 = arith.mulf %399, %403 : vector<8x32xf32>
    %405 = arith.addf %401, %404 : vector<8x32xf32>
    %406 = math.tanh %405 : vector<8x32xf32>
    %cst_76 = arith.constant 1.000000e+00 : f32
    %407 = vector.broadcast %cst_76 : f32 to vector<8x32xf32>
    %408 = arith.subf %407, %400 : vector<8x32xf32>
    %409 = arith.mulf %408, %406 : vector<8x32xf32>
    %410 = arith.mulf %400, %387 : vector<8x32xf32>
    %411 = arith.addf %409, %410 : vector<8x32xf32>
    %cst_77 = arith.constant dense<0.000000e+00> : vector<8x96xf32>
    %412 = tpu.matmul %411, %7, %cst_77 {dimension_numbers = #tpu.dot_dimension_numbers<[1], [0], [0], [1], [0, 0, 1, 1], [], []>} : vector<8x32xf32>, vector<32x96xf32>, vector<8x96xf32> -> vector<8x96xf32>
    %413 = vector.broadcast %20 : vector<1x96xf32> to vector<8x96xf32>
    %414 = arith.addf %412, %413 : vector<8x96xf32>
    %415 = math.tanh %414 : vector<8x96xf32>
    %416 = vector.broadcast %21 : vector<1x96xf32> to vector<8x96xf32>
    %417 = arith.mulf %416, %415 : vector<8x96xf32>
    %418 = vector.broadcast %22 : vector<1x96xf32> to vector<8x96xf32>
    %419 = arith.addf %417, %418 : vector<8x96xf32>
    %420 = vector.extract_strided_slice %419 {offsets = [0, 0], sizes = [8, 2], strides = [1, 1]} : vector<8x96xf32> to vector<8x2xf32>
    %c0_78 = arith.constant 0 : index
    %c0_79 = arith.constant 0 : index
    %421 = vector.load %arg3[%c0_78, %c0_79] : memref<8x2xf32, #tpu.memory_space<vmem>>, vector<8x2xf32>
    tpu.vector_store %arg3[%c0_78, %c0_79], %420 {strides = array<i32>} : memref<8x2xf32, #tpu.memory_space<vmem>>, vector<8x2xf32>,
    return
  }
}

</mosaic_0001>

<bundles_post_ra>
// kernel: gru_policy_forward.1
= control target key start
LH: loop header
LB: loop body
LE: loop exit
PB: predicated region body
PF: predicated region fallthrough
CT: control target
= control target key end

     0   :  { %vm64_vm0 = vcmask 64512   ;;  %v3308_v0 = vmov 0.0   ;;  %vm3309_vm1 = vmmov 0   ;;  %v3310_v9 = vmov 0.0|0.0   ;;  %s3311_s11 = smov 64   ;;  %s3312_s27 = smov 96   ;;  %s3811_s1 = inlined_call_operand.vmem [shape: f32[144,96], index: 1, kind: input, shape index: {}]   ;;  %s3812_s0 = inlined_call_operand.vmem [shape: f32[72,8], index: 0, kind: input, shape index: {}]   ;;  %s3813_s2 = inlined_call_operand.vmem [shape: f32[8,96], index: 2, kind: input, shape index: {}]   ;;  %s3814_s3 = inlined_call_operand.vmem [shape: f32[8,2], index: 3, kind: output, shape index: {}]  }
   0x1   :  { %2761 = vmatprep.subr.mxu0 %v3308_v0  ;;  %v23_v1 = vld [vmem:[%s3811_s1] sm:$0xff]  ;;  %2763 = vmatprep.mubr.msk.f32.mxu0 %vm3309_vm1, %v3308_v0  ;;  %v24_v2 = vld [vmem:[%s3811_s1 + $0x8] sm:$0xff]  ;;  %v16_v5 = vld [vmem:[%s3812_s0 + $0x10] sm:$0xff]  ;;  %vm268_vm2 = vcmask 261120   ;;  %vm2564_vm3 = vcmask 15360  }
   0x2   :  { %v14_v3 = vld [vmem:[%s3812_s0] sm:$0xff]  ;;  %2762 = vmatpush3.msra.mxu0 %v23_v1  ;;  %2766 = vmatprep.subr.mxu1 %v24_v2  ;;  %v15_v4 = vld [vmem:[%s3812_s0 + $0x8] sm:$0xff]  ;;  %v25_v6 = vld [vmem:[%s3811_s1 + $0x10] sm:$0xff] }
   0x3   :  { %2764 = vmatmul.mubr.msk.f32.vlgmr.msra.gmra.mrb[0].mxu0 %vm64_vm0, %v14_v3  ;;  %2767 = vmatpush3.msra.mxu1 %v24_v2  ;;  %v26_v7 = vld [vmem:[%s3811_s1 + $0x18] sm:$0xff]  ;;  %v27_v11 = vld [vmem:[%s3811_s1 + $0x20] sm:$0xff]  ;;  %v28_v12 = vld [vmem:[%s3811_s1 + $0x28] sm:$0xff] }
   0x4   :  { %v17_v8 = vld [vmem:[%s3812_s0 + $0x18] sm:$0xff]  ;;  %2768 = vmatprep.mubr.msk.f32.mxu1 %vm64_vm0, %v15_v4  ;;  %3055 = vmatprep.subr.bf16.mxu0 %v3310_v9  ;;  %v3363_v10 = vpack.c.bf16 %v26_v7, %v25_v6  ;;  %v18_v13 = vld [vmem:[%s3812_s0 + $0x20] sm:$0xff]  ;;  %v3379_v14 = vpack.c.bf16 %v28_v12, %v27_v11  ;;  %v19_v16 = vld [vmem:[%s3812_s0 + $0x28] sm:$0xff] }
   0x5   :  { %2769 = vmatmul.mubr.msk.f32.vlgmr.msra.gmra.mrb[0].mxu1 %vm64_vm0, %v16_v5  ;;  %2788 = vmatprep.mubr.msk.f32.mxu0 %vm3309_vm1, %v3308_v0  ;;  %v2571_v15 = vld [vmem:[%s3813_s2 + $0x1] ss:$0 sm:$0xff]  ;;  %v20_v17 = vld [vmem:[%s3812_s0 + $0x30] sm:$0xff]  ;;  %v21_v18 = vld [vmem:[%s3812_s0 + $0x38] sm:$0xff] }
   0x6   :  { %3057 = vmatpush3.bf16.msra.mxu0 %v3363_v10  ;;  %2771 = vmatprep.mubr.msk.f32.mxu1 %vm64_vm0, %v17_v8  ;;  %v22_v19 = vld [vmem:[%s3812_s0 + $0x40] sm:$0xff]  ;;  %v29_v53 = vld [vmem:[%s3811_s1 + $0x30] sm:$0xff]  ;;  %v30_v54 = vld [vmem:[%s3811_s1 + $0x38] sm:$0xff] }
   0x7   :  { %3058 = vmatprep.subr.bf16.mxu0 %v3310_v9  ;;  %350 = vrot.lane.b32.xlu0 %v2571_v15, %s3311_s11  ;;  %v2570_v20 = vld [vmem:[%s3813_s2] ss:$0 sm:$0xff]  ;;  %v3446_v56 = vpack.c.bf16 %v30_v54, %v29_v53  ;;  %v32_v57 = vld [vmem:[%s3811_s1 + $0x48] sm:$0xff]  ;;  %v2573_v62 = vld [vmem:[%s3813_s2 + $0x3] ss:$0 sm:$0xff] }
   0x8   :  { %3067 = vmatprep.subr.bf16.mxu1 %v3310_v9  ;;  %v31_v55 = vld [vmem:[%s3811_s1 + $0x40] sm:$0xff]  ;;  %v33_v3 = vld [vmem:[%s3811_s1 + $0x50] sm:$0xff]  ;;  %v34_v4 = vld [vmem:[%s3811_s1 + $0x58] sm:$0xff] }
   0x9   :  { %2772 = vmatmul.mubr.msk.f32.gmra.mrb[2].mxu1 %vm64_vm0, %v18_v13  ;;  %v3452_v58 = vpack.c.bf16 %v32_v57, %v31_v55  ;;  %v3472_v5 = vpack.c.bf16 %v34_v4, %v33_v3  ;;  %v35_v6 = vld [vmem:[%s3811_s1 + $0x60] sm:$0xff]  ;;  %v36_v7 = vld [vmem:[%s3811_s1 + $0x68] sm:$0xff] }
   0xa   :  { %3060 = vmatpush3.bf16.msra.mxu0 %v3379_v14  ;;  %2774 = vmatprep.mubr.msk.f32.mxu1 %vm64_vm0, %v19_v16  ;;  %v3483_v11 = vpack.c.bf16 %v36_v7, %v35_v6 }
   0xb   :  { %3061 = vmatprep.subr.bf16.mxu0 %v3310_v9  ;;  %3069 = vmatpush3.bf16.msra.mxu1 %v3446_v56 }
   0xc   :  { %3070 = vmatprep.subr.bf16.mxu1 %v3310_v9 }
   0xd   :  { %2789 = vmatmul.mubr.f32.vlgmr.msra.gmra.mrb[2].mxu0 %v3308_v0  ;;  %2775 = vmatmul.mubr.msk.f32.gmra.mrb[4].mxu1 %vm64_vm0, %v20_v17 }
   0xe   :  { %2777 = vmatprep.mubr.msk.f32.mxu1 %vm64_vm0, %v21_v18  ;;  %3063 = vmatpush3.bf16.msra.mxu0 %v3363_v10 }
   0xf   :  { %3064 = vmatprep.subr.bf16.mxu0 %v3310_v9  ;;  %2799 = vmatprep.mubr.msk.f32.mxu0 %vm3309_vm1, %v3308_v0 }
  0x10   :  { %3072 = vmatpush3.bf16.msra.mxu1 %v3452_v58 }
  0x11   :  { %2778 = vmatmul.mubr.msk.f32.gmra.mrb[6].mxu1 %vm64_vm0, %v22_v19  ;;  %3079 = vmatprep.subr.bf16.mxu1 %v3310_v9 }
  0x12   :  { %3066 = vmatpush3.bf16.msra.mxu0 %v3379_v14  ;;  %2810 = vmatprep.mubr.msk.f32.mxu1 %vm3309_vm1, %v3308_v0 }
  0x13   :  { %3073 = vmatprep.subr.bf16.mxu0 %v3310_v9 }
  0x79   :  { %v3424_v32 = vpop.permute.xlu0 %350 }
  0xd6   :  { %v134_v21 = vpop.f32.mrb[0].mxu0 }
  0xd7   :  { %v135_v22 = vadd.f32 %v2570_v20, %v134_v21  ;;  %v2765_v23 = vpop.f32.mrb[1].mxu0 }
  0xd8   :  { %v2770_v24 = vpop.f32.mrb[0].mxu1  ;;  %v3513_v23 = vld [vmem:[%s3813_s2 + $0x2] ss:$0 sm:$0xff] }
  0xd9   :  { %v3418_v25 = vadd.f32 %v2770_v24, %v135_v22  ;;  %v228_v26 = vpop.f32.mrb[1].mxu1 }
  0xda   :  { %v267_v27 = vadd.f32 %v228_v26, %v135_v22 }
  0xdc   :  { %v2773_v28 = vpop.f32.mrb[2].mxu1 }
  0xdd   :  { %v3420_v29 = vadd.f32 %v2773_v28, %v135_v22  ;;  %v238_v30 = vpop.f32.mrb[3].mxu1 }
  0xde   :  { %v3422_v31 = vadd.f32 %v238_v30, %v135_v22 }
  0xe0   :  { %v338_v33 = vpop.f32.mrb[2].mxu0  ;;  %v2776_v34 = vpop.f32.mrb[4].mxu1 }
  0xe1   :  { %v353_v35 = vadd.f32 %v3424_v32, %v338_v33  ;;  %v3427_v36 = vadd.f32 %v2776_v34, %v135_v22  ;;  %v2790_v37 = vpop.f32.mrb[3].mxu0  ;;  %v248_v38 = vpop.f32.mrb[5].mxu1  ;;  %v342_v44 = vadd.f32 %v338_v33, %v267_v27 }
  0xe2   :  { %v3429_v39 = vadd.f32 %v248_v38, %v135_v22 }
  0xe3   :  { %355 = vrot.lane.b32.xlu0 %v353_v35, %s3311_s11  ;;  %v2583_v45 = vmul.f32 -1.442695, %v342_v44 }
  0xe4   :  { %v2779_v40 = vpop.f32.mrb[6].mxu1 }
  0xe5   :  { %v3432_v41 = vadd.f32 %v2779_v40, %v135_v22  ;;  %v258_v42 = vpop.f32.mrb[7].mxu1  ;;  %3210 = vpow2.f32 %v2583_v45 }
  0xe6   :  { %v3434_v43 = vadd.f32 %v258_v42, %v135_v22 }
  0xef   :  { %v3211_v46 = vpop.eup %3210 }
  0xf0   :  { %v346_v47 = vadd.f32 1.0, %v3211_v46 }
  0xf2   :  { %3212 = vrcp.f32 %v346_v47 }
  0xfc   :  { %v3213_v48 = vpop.eup %3212 }
  0xfd   :  { %v365_v60 = vsub.f32 1.0, %v3213_v48  ;;  %v371_v63 = vmul.f32 0.0, %v3213_v48 }
 0x155   :  { %v356_v49 = vpop.permute.xlu0 %355 }
 0x156   :  { %v358_v50 = vmul.f32 %v3213_v48, %v356_v49 }
 0x158   :  { %360 = vrot.lane.b32.xlu1 %v358_v50, %s3311_s11 }
 0x1ca   :  { %v361_v51 = vpop.permute.xlu1 %360 }
 0x1cb   :  { %v363_v52 = vadd.f32 %v361_v51, %v267_v27 }
 0x1cd   :  { %3214 = vtanh.f32 %v363_v52 }
 0x1d7   :  { %v3215_v59 = vpop.eup %3214 }
 0x1d8   :  { %367 = vrot.lane.b32.xlu1 %v3215_v59, %s3312_s27 }
 0x1dc   :  { %624 = vrot.lane.b32.xlu1 %v2573_v62, %s3311_s11 }
 0x24a   :  { %v368_v61 = vpop.permute.xlu1 %367 }
 0x24b   :  { %v370_v1 = vmul.f32 %v368_v61, %v365_v60 }
 0x24d   :  { %v3462_v2 = vadd.f32 %v371_v63, %v370_v1 }
 0x24e   :  { %v3505_v18 = vpop.permute.xlu1 %624 }
 0x24f   :  { %375 = vrot.lane.b32.xlu0 %v3462_v2, %s3312_s27 }
 0x2c1   :  { %v376_v8 = vpop.permute.xlu0 %375 }
 0x2c2   :  { %2800 = vmatmul.mubr.msk.f32.vlgmr.msra.gmra.mrb[4].mxu0 %vm268_vm2, %v376_v8  ;;  %2811 = vmatmul.mubr.msk.f32.vlgmr.msra.gmra.mrb[8].mxu1 %vm268_vm2, %v376_v8 }
 0x2c3   :  { %3075 = vmatpush3.bf16.msra.mxu0 %v3472_v5  ;;  %2821 = vmatprep.mubr.msk.f32.mxu0 %vm3309_vm1, %v3308_v0 }
 0x2c4   :  { %3076 = vmatprep.subr.bf16.mxu0 %v3310_v9  ;;  %3081 = vmatpush3.bf16.msra.mxu1 %v3363_v10 }
 0x2c5   :  { %3082 = vmatprep.subr.bf16.mxu1 %v3310_v9  ;;  %2832 = vmatprep.mubr.msk.f32.mxu1 %vm3309_vm1, %v3308_v0 }
 0x2c7   :  { %3078 = vmatpush3.bf16.msra.mxu0 %v3483_v11 }
 0x2c8   :  { %3085 = vmatprep.subr.bf16.mxu0 %v3310_v9  ;;  %3084 = vmatpush3.bf16.msra.mxu1 %v3379_v14 }
 0x2c9   :  { %3091 = vmatprep.subr.bf16.mxu1 %v3310_v9 }
 0x2ca   :  { %2822 = vmatmul.mubr.f32.vlgmr.msra.gmra.mrb[6].mxu0 %v3308_v0 }
 0x2cb   :  { %3087 = vmatpush3.bf16.msra.mxu0 %v3446_v56  ;;  %2843 = vmatprep.mubr.msk.f32.mxu0 %vm3309_vm1, %v3308_v0 }
 0x2cc   :  { %3088 = vmatprep.subr.bf16.mxu0 %v3310_v9 }
 0x2cf   :  { %3090 = vmatpush3.bf16.msra.mxu0 %v3452_v58 }
 0x2d0   :  { %3097 = vmatprep.subr.bf16.mxu0 %v3310_v9 }
 0x395   :  { %v445_v12 = vpop.f32.mrb[4].mxu0  ;;  %v542_v13 = vpop.f32.mrb[8].mxu1 }
 0x396   :  { %v456_v15 = vadd.f32 %v445_v12, %v3424_v32  ;;  %v2801_v16 = vpop.f32.mrb[5].mxu0  ;;  %v2812_v17 = vpop.f32.mrb[9].mxu1  ;;  %v449_v22 = vadd.f32 %v445_v12, %v3418_v25  ;;  %v543_v26 = vadd.f32 %v3513_v23, %v542_v13 }
 0x398   :  { %458 = vrot.lane.b32.xlu0 %v456_v15, %s3311_s11  ;;  %v2585_v24 = vmul.f32 -1.442695, %v449_v22 }
 0x39a   :  { %3216 = vpow2.f32 %v2585_v24 }
 0x39d   :  { %v612_v19 = vpop.f32.mrb[6].mxu0 }
 0x39e   :  { %v627_v20 = vadd.f32 %v3505_v18, %v612_v19  ;;  %v2823_v21 = vpop.f32.mrb[7].mxu0  ;;  %v616_v27 = vadd.f32 %v612_v19, %v543_v26 }
 0x3a0   :  { %629 = vrot.lane.b32.xlu1 %v627_v20, %s3311_s11  ;;  %v2587_v28 = vmul.f32 -1.442695, %v616_v27 }
 0x3a2   :  { %3218 = vpow2.f32 %v2587_v28 }
 0x3a4   :  { %v3217_v30 = vpop.eup %3216 }
 0x3a5   :  { %v453_v33 = vadd.f32 1.0, %v3217_v30 }
 0x3a7   :  { %3220 = vrcp.f32 %v453_v33 }
 0x3ac   :  { %v3219_v34 = vpop.eup %3218 }
 0x3ad   :  { %v620_v35 = vadd.f32 1.0, %v3219_v34 }
 0x3af   :  { %3222 = vrcp.f32 %v620_v35 }
 0x3b1   :  { %v3221_v37 = vpop.eup %3220 }
 0x3b2   :  { %v468_v52 = vsub.f32 1.0, %v3221_v37  ;;  %v474_v54 = vmul.f32 %v3221_v37, %v3462_v2 }
 0x3b9   :  { %v3223_v42 = vpop.eup %3222 }
 0x3ba   :  { %v645_v60 = vmul.f32 0.0, %v3223_v42 }
 0x40a   :  { %v459_v38 = vpop.permute.xlu0 %458 }
 0x40b   :  { %v461_v40 = vmul.f32 %v3221_v37, %v459_v38 }
 0x40d   :  { %463 = vrot.lane.b32.xlu0 %v461_v40, %s3311_s11 }
 0x412   :  { %v630_v44 = vpop.permute.xlu1 %629 }
 0x413   :  { %v632_v45 = vmul.f32 %v3223_v42, %v630_v44 }
 0x415   :  { %634 = vrot.lane.b32.xlu1 %v632_v45, %s3311_s11 }
 0x47f   :  { %v464_v46 = vpop.permute.xlu0 %463 }
 0x480   :  { %v466_v47 = vadd.f32 %v464_v46, %v3418_v25  ;;  %v639_v25 = vsub.f32 1.0, %v3223_v42 }
 0x482   :  { %3224 = vtanh.f32 %v466_v47 }
 0x487   :  { %v635_v48 = vpop.permute.xlu1 %634 }
 0x488   :  { %v637_v49 = vadd.f32 %v635_v48, %v543_v26 }
 0x48a   :  { %3226 = vtanh.f32 %v637_v49 }
 0x48c   :  { %v3225_v50 = vpop.eup %3224 }
 0x48d   :  { %470 = vrot.lane.b32.xlu0 %v3225_v50, %s3312_s27 }
 0x494   :  { %v3227_v51 = vpop.eup %3226 }
 0x495   :  { %641 = vrot.lane.b32.xlu1 %v3227_v51, %s3312_s27 }
 0x4ff   :  { %v471_v53 = vpop.permute.xlu0 %470 }
 0x500   :  { %v473_v55 = vmul.f32 %v471_v53, %v468_v52 }
 0x502   :  { %v3522_v57 = vadd.f32 %v474_v54, %v473_v55 }
 0x504   :  { %649 = vrot.lane.b32.xlu0 %v3522_v57, %s3312_s27 }
 0x507   :  { %v642_v59 = vpop.permute.xlu1 %641 }
 0x508   :  { %v644_v61 = vmul.f32 %v642_v59, %v639_v25 }
 0x50a   :  { %v3526_v62 = vadd.f32 %v645_v60, %v644_v61 }
 0x50c   :  { %821 = vrot.lane.b32.xlu1 %v3526_v62, %s3312_s27 }
 0x576   :  { %v650_v63 = vpop.permute.xlu0 %649 }
 0x577   :  { %2833 = vmatmul.mubr.msk.f32.vlgmr.msra.gmra.mrb[10].mxu1 %vm268_vm2, %v650_v63  ;;  %2844 = vmatmul.mubr.msk.f32.vlgmr.msra.gmra.mrb[8].mxu0 %vm268_vm2, %v650_v63 }
 0x578   :  { %3093 = vmatpush3.bf16.msra.mxu1 %v3472_v5  ;;  %2854 = vmatprep.mubr.msk.f32.mxu1 %vm3309_vm1, %v3308_v0 }
 0x579   :  { %3094 = vmatprep.subr.bf16.mxu1 %v3310_v9  ;;  %3099 = vmatpush3.bf16.msra.mxu0 %v3363_v10 }
 0x57a   :  { %3100 = vmatprep.subr.bf16.mxu0 %v3310_v9  ;;  %2865 = vmatprep.mubr.msk.f32.mxu0 %vm3309_vm1, %v3308_v0 }
 0x57c   :  { %3096 = vmatpush3.bf16.msra.mxu1 %v3483_v11 }
 0x57d   :  { %3103 = vmatprep.subr.bf16.mxu1 %v3310_v9  ;;  %3102 = vmatpush3.bf16.msra.mxu0 %v3379_v14 }
 0x57e   :  { %v822_v1 = vpop.permute.xlu1 %821  ;;  %3109 = vmatprep.subr.bf16.mxu0 %v3310_v9 }
 0x57f   :  { %2855 = vmatmul.mubr.msk.f32.vlgmr.msra.gmra.mrb[12].mxu1 %vm268_vm2, %v822_v1 }
 0x580   :  { %3105 = vmatpush3.bf16.msra.mxu1 %v3446_v56  ;;  %2876 = vmatprep.mubr.msk.f32.mxu1 %vm3309_vm1, %v3308_v0 }
 0x581   :  { %3106 = vmatprep.subr.bf16.mxu1 %v3310_v9 }
 0x584   :  { %3108 = vmatpush3.bf16.msra.mxu1 %v3452_v58 }
 0x585   :  { %3115 = vmatprep.subr.bf16.mxu1 %v3310_v9 }
 0x64a   :  { %v719_v2 = vpop.f32.mrb[10].mxu1  ;;  %v816_v3 = vpop.f32.mrb[8].mxu0 }
 0x64b   :  { %v730_v4 = vadd.f32 %v719_v2, %v3424_v32  ;;  %v2834_v6 = vpop.f32.mrb[11].mxu1  ;;  %v2845_v7 = vpop.f32.mrb[9].mxu0  ;;  %v723_v15 = vadd.f32 %v719_v2, %v3422_v31  ;;  %v817_v17 = vadd.f32 %v3513_v23, %v816_v3 }
 0x64d   :  { %732 = vrot.lane.b32.xlu0 %v730_v4, %s3311_s11  ;;  %v2589_v16 = vmul.f32 -1.442695, %v723_v15 }
 0x64f   :  { %3228 = vpow2.f32 %v2589_v16 }
 0x652   :  { %v891_v8 = vpop.f32.mrb[12].mxu1 }
 0x653   :  { %v902_v12 = vadd.f32 %v891_v8, %v3505_v18  ;;  %v2856_v13 = vpop.f32.mrb[13].mxu1  ;;  %v895_v19 = vadd.f32 %v891_v8, %v817_v17 }
 0x655   :  { %904 = vrot.lane.b32.xlu1 %v902_v12, %s3311_s11  ;;  %v2592_v20 = vmul.f32 -1.442695, %v895_v19 }
 0x657   :  { %3230 = vpow2.f32 %v2592_v20 }
 0x659   :  { %v3229_v21 = vpop.eup %3228 }
 0x65a   :  { %v727_v22 = vadd.f32 1.0, %v3229_v21 }
 0x65c   :  { %3232 = vrcp.f32 %v727_v22 }
 0x661   :  { %v3231_v24 = vpop.eup %3230 }
 0x662   :  { %v899_v26 = vadd.f32 1.0, %v3231_v24 }
 0x664   :  { %3234 = vrcp.f32 %v899_v26 }
 0x666   :  { %v3233_v27 = vpop.eup %3232 }
 0x667   :  { %v742_v46 = vsub.f32 1.0, %v3233_v27  ;;  %v748_v48 = vmul.f32 %v3233_v27, %v3522_v57 }
 0x66e   :  { %v3235_v33 = vpop.eup %3234 }
 0x66f   :  { %v920_v52 = vmul.f32 %v3235_v33, %v3526_v62 }
 0x6bf   :  { %v733_v28 = vpop.permute.xlu0 %732 }
 0x6c0   :  { %v735_v30 = vmul.f32 %v3233_v27, %v733_v28 }
 0x6c2   :  { %737 = vrot.lane.b32.xlu0 %v735_v30, %s3311_s11 }
 0x6c7   :  { %v905_v34 = vpop.permute.xlu1 %904 }
 0x6c8   :  { %v907_v35 = vmul.f32 %v3235_v33, %v905_v34 }
 0x6ca   :  { %909 = vrot.lane.b32.xlu1 %v907_v35, %s3311_s11 }
 0x734   :  { %v738_v37 = vpop.permute.xlu0 %737 }
 0x735   :  { %v740_v38 = vadd.f32 %v738_v37, %v3422_v31  ;;  %v914_v31 = vsub.f32 1.0, %v3235_v33 }
 0x737   :  { %3236 = vtanh.f32 %v740_v38 }
 0x73c   :  { %v910_v40 = vpop.permute.xlu1 %909 }
 0x73d   :  { %v912_v42 = vadd.f32 %v910_v40, %v817_v17 }
 0x73f   :  { %3238 = vtanh.f32 %v912_v42 }
 0x741   :  { %v3237_v44 = vpop.eup %3236 }
 0x742   :  { %744 = vrot.lane.b32.xlu0 %v3237_v44, %s3312_s27 }
 0x749   :  { %v3239_v45 = vpop.eup %3238 }
 0x74a   :  { %916 = vrot.lane.b32.xlu1 %v3239_v45, %s3312_s27 }
 0x7b4   :  { %v745_v47 = vpop.permute.xlu0 %744 }
 0x7b5   :  { %v747_v49 = vmul.f32 %v745_v47, %v742_v46 }
 0x7b7   :  { %v3563_v50 = vadd.f32 %v748_v48, %v747_v49 }
 0x7b9   :  { %924 = vrot.lane.b32.xlu0 %v3563_v50, %s3312_s27 }
 0x7bc   :  { %v917_v51 = vpop.permute.xlu1 %916 }
 0x7bd   :  { %v919_v53 = vmul.f32 %v917_v51, %v914_v31 }
 0x7bf   :  { %v3568_v54 = vadd.f32 %v920_v52, %v919_v53 }
 0x7c1   :  { %1096 = vrot.lane.b32.xlu1 %v3568_v54, %s3312_s27 }
 0x82b   :  { %v925_v55 = vpop.permute.xlu0 %924 }
 0x82c   :  { %2866 = vmatmul.mubr.msk.f32.vlgmr.msra.gmra.mrb[10].mxu0 %vm268_vm2, %v925_v55  ;;  %2877 = vmatmul.mubr.msk.f32.vlgmr.msra.gmra.mrb[14].mxu1 %vm268_vm2, %v925_v55 }
 0x82d   :  { %3111 = vmatpush3.bf16.msra.mxu0 %v3472_v5  ;;  %2887 = vmatprep.mubr.msk.f32.mxu0 %vm3309_vm1, %v3308_v0 }
 0x82e   :  { %3112 = vmatprep.subr.bf16.mxu0 %v3310_v9  ;;  %3117 = vmatpush3.bf16.msra.mxu1 %v3363_v10 }
 0x82f   :  { %3118 = vmatprep.subr.bf16.mxu1 %v3310_v9  ;;  %2898 = vmatprep.mubr.msk.f32.mxu1 %vm3309_vm1, %v3308_v0 }
 0x831   :  { %3114 = vmatpush3.bf16.msra.mxu0 %v3483_v11 }
 0x832   :  { %3121 = vmatprep.subr.bf16.mxu0 %v3310_v9  ;;  %3120 = vmatpush3.bf16.msra.mxu1 %v3379_v14 }
 0x833   :  { %v1097_v57 = vpop.permute.xlu1 %1096  ;;  %3127 = vmatprep.subr.bf16.mxu1 %v3310_v9 }
 0x834   :  { %2888 = vmatmul.mubr.msk.f32.vlgmr.msra.gmra.mrb[12].mxu0 %vm268_vm2, %v1097_v57 }
 0x835   :  { %3123 = vmatpush3.bf16.msra.mxu0 %v3446_v56  ;;  %2909 = vmatprep.mubr.msk.f32.mxu0 %vm3309_vm1, %v3308_v0 }
 0x836   :  { %3124 = vmatprep.subr.bf16.mxu0 %v3310_v9 }
 0x839   :  { %3126 = vmatpush3.bf16.msra.mxu0 %v3452_v58 }
 0x83a   :  { %3133 = vmatprep.subr.bf16.mxu0 %v3310_v9 }
 0x8ff   :  { %v994_v25 = vpop.f32.mrb[10].mxu0  ;;  %v1091_v59 = vpop.f32.mrb[14].mxu1 }
 0x900   :  { %v1005_v60 = vadd.f32 %v994_v25, %v3424_v32  ;;  %v2867_v61 = vpop.f32.mrb[11].mxu0  ;;  %v2878_v62 = vpop.f32.mrb[15].mxu1  ;;  %v998_v3 = vadd.f32 %v994_v25, %v3420_v29  ;;  %v1092_v6 = vadd.f32 %v3513_v23, %v1091_v59 }
 0x902   :  { %1007 = vrot.lane.b32.xlu0 %v1005_v60, %s3311_s11  ;;  %v2594_v4 = vmul.f32 -1.442695, %v998_v3 }
 0x904   :  { %3240 = vpow2.f32 %v2594_v4 }
 0x907   :  { %v1166_v63 = vpop.f32.mrb[12].mxu0 }
 0x908   :  { %v1177_v1 = vadd.f32 %v1166_v63, %v3505_v18  ;;  %v2889_v2 = vpop.f32.mrb[13].mxu0  ;;  %v1170_v7 = vadd.f32 %v1166_v63, %v1092_v6 }
 0x90a   :  { %1179 = vrot.lane.b32.xlu1 %v1177_v1, %s3311_s11  ;;  %v2597_v8 = vmul.f32 -1.442695, %v1170_v7 }
 0x90c   :  { %3242 = vpow2.f32 %v2597_v8 }
 0x90e   :  { %v3241_v12 = vpop.eup %3240 }
 0x90f   :  { %v1002_v13 = vadd.f32 1.0, %v3241_v12 }
 0x911   :  { %3244 = vrcp.f32 %v1002_v13 }
 0x916   :  { %v3243_v15 = vpop.eup %3242 }
 0x917   :  { %v1174_v16 = vadd.f32 1.0, %v3243_v15 }
 0x919   :  { %3246 = vrcp.f32 %v1174_v16 }
 0x91b   :  { %v3245_v17 = vpop.eup %3244 }
 0x91c   :  { %v1017_v35 = vsub.f32 1.0, %v3245_v17  ;;  %v1023_v38 = vmul.f32 %v3245_v17, %v3563_v50 }
 0x923   :  { %v3247_v21 = vpop.eup %3246 }
 0x924   :  { %v1195_v45 = vmul.f32 %v3247_v21, %v3568_v54 }
 0x974   :  { %v1008_v19 = vpop.permute.xlu0 %1007 }
 0x975   :  { %v1010_v20 = vmul.f32 %v3245_v17, %v1008_v19 }
 0x977   :  { %1012 = vrot.lane.b32.xlu0 %v1010_v20, %s3311_s11 }
 0x97c   :  { %v1180_v22 = vpop.permute.xlu1 %1179 }
 0x97d   :  { %v1182_v24 = vmul.f32 %v3247_v21, %v1180_v22 }
 0x97f   :  { %1184 = vrot.lane.b32.xlu1 %v1182_v24, %s3311_s11 }
 0x9e9   :  { %v1013_v26 = vpop.permute.xlu0 %1012 }
 0x9ea   :  { %v1015_v27 = vadd.f32 %v1013_v26, %v3420_v29  ;;  %v1189_v29 = vsub.f32 1.0, %v3247_v21 }
 0x9ec   :  { %3248 = vtanh.f32 %v1015_v27 }
 0x9f1   :  { %v1185_v28 = vpop.permute.xlu1 %1184 }
 0x9f2   :  { %v1187_v30 = vadd.f32 %v1185_v28, %v1092_v6 }
 0x9f4   :  { %3250 = vtanh.f32 %v1187_v30 }
 0x9f6   :  { %v3249_v33 = vpop.eup %3248 }
 0x9f7   :  { %1019 = vrot.lane.b32.xlu0 %v3249_v33, %s3312_s27 }
 0x9fe   :  { %v3251_v34 = vpop.eup %3250 }
 0x9ff   :  { %1191 = vrot.lane.b32.xlu1 %v3251_v34, %s3312_s27 }
 0xa69   :  { %v1020_v37 = vpop.permute.xlu0 %1019 }
 0xa6a   :  { %v1022_v40 = vmul.f32 %v1020_v37, %v1017_v35 }
 0xa6c   :  { %v3605_v42 = vadd.f32 %v1023_v38, %v1022_v40 }
 0xa6e   :  { %1199 = vrot.lane.b32.xlu0 %v3605_v42, %s3312_s27 }
 0xa71   :  { %v1192_v44 = vpop.permute.xlu1 %1191 }
 0xa72   :  { %v1194_v46 = vmul.f32 %v1192_v44, %v1189_v29 }
 0xa74   :  { %v3610_v47 = vadd.f32 %v1195_v45, %v1194_v46 }
 0xa76   :  { %1371 = vrot.lane.b32.xlu1 %v3610_v47, %s3312_s27 }
 0xae0   :  { %v1200_v48 = vpop.permute.xlu0 %1199 }
 0xae1   :  { %2899 = vmatmul.mubr.msk.f32.vlgmr.msra.gmra.mrb[16].mxu1 %vm268_vm2, %v1200_v48  ;;  %2910 = vmatmul.mubr.msk.f32.vlgmr.msra.gmra.mrb[14].mxu0 %vm268_vm2, %v1200_v48 }
 0xae2   :  { %3129 = vmatpush3.bf16.msra.mxu1 %v3472_v5  ;;  %2920 = vmatprep.mubr.msk.f32.mxu1 %vm3309_vm1, %v3308_v0 }
 0xae3   :  { %3130 = vmatprep.subr.bf16.mxu1 %v3310_v9  ;;  %3135 = vmatpush3.bf16.msra.mxu0 %v3363_v10 }
 0xae4   :  { %3136 = vmatprep.subr.bf16.mxu0 %v3310_v9  ;;  %2931 = vmatprep.mubr.msk.f32.mxu0 %vm3309_vm1, %v3308_v0 }
 0xae6   :  { %3132 = vmatpush3.bf16.msra.mxu1 %v3483_v11 }
 0xae7   :  { %3139 = vmatprep.subr.bf16.mxu1 %v3310_v9  ;;  %3138 = vmatpush3.bf16.msra.mxu0 %v3379_v14 }
 0xae8   :  { %v1372_v49 = vpop.permute.xlu1 %1371  ;;  %3145 = vmatprep.subr.bf16.mxu0 %v3310_v9 }
 0xae9   :  { %2921 = vmatmul.mubr.msk.f32.vlgmr.msra.gmra.mrb[18].mxu1 %vm268_vm2, %v1372_v49 }
 0xaea   :  { %3141 = vmatpush3.bf16.msra.mxu1 %v3446_v56  ;;  %2942 = vmatprep.mubr.msk.f32.mxu1 %vm3309_vm1, %v3308_v0 }
 0xaeb   :  { %3142 = vmatprep.subr.bf16.mxu1 %v3310_v9 }
 0xaee   :  { %3144 = vmatpush3.bf16.msra.mxu1 %v3452_v58 }
 0xaef   :  { %3151 = vmatprep.subr.bf16.mxu1 %v3310_v9 }
 0xbb4   :  { %v1269_v50 = vpop.f32.mrb[16].mxu1  ;;  %v1366_v31 = vpop.f32.mrb[14].mxu0 }
 0xbb5   :  { %v1280_v51 = vadd.f32 %v1269_v50, %v3424_v32  ;;  %v2900_v52 = vpop.f32.mrb[17].mxu1  ;;  %v2911_v53 = vpop.f32.mrb[15].mxu0  ;;  %v1273_v25 = vadd.f32 %v1269_v50, %v3429_v39  ;;  %v1367_v60 = vadd.f32 %v3513_v23, %v1366_v31 }
 0xbb7   :  { %1282 = vrot.lane.b32.xlu0 %v1280_v51, %s3311_s11  ;;  %v2599_v59 = vmul.f32 -1.442695, %v1273_v25 }
 0xbb9   :  { %3252 = vpow2.f32 %v2599_v59 }
 0xbbc   :  { %v1441_v54 = vpop.f32.mrb[18].mxu1 }
 0xbbd   :  { %v1452_v55 = vadd.f32 %v1441_v54, %v3505_v18  ;;  %v2922_v57 = vpop.f32.mrb[19].mxu1  ;;  %v1445_v61 = vadd.f32 %v1441_v54, %v1367_v60 }
 0xbbf   :  { %1454 = vrot.lane.b32.xlu1 %v1452_v55, %s3311_s11  ;;  %v2602_v62 = vmul.f32 -1.442695, %v1445_v61 }
 0xbc1   :  { %3254 = vpow2.f32 %v2602_v62 }
 0xbc3   :  { %v3253_v63 = vpop.eup %3252 }
 0xbc4   :  { %v1277_v1 = vadd.f32 1.0, %v3253_v63 }
 0xbc6   :  { %3256 = vrcp.f32 %v1277_v1 }
 0xbcb   :  { %v3255_v2 = vpop.eup %3254 }
 0xbcc   :  { %v1449_v3 = vadd.f32 1.0, %v3255_v2 }
 0xbce   :  { %3258 = vrcp.f32 %v1449_v3 }
 0xbd0   :  { %v3257_v4 = vpop.eup %3256 }
 0xbd1   :  { %v1292_v22 = vsub.f32 1.0, %v3257_v4  ;;  %v1298_v26 = vmul.f32 %v3257_v4, %v3605_v42 }
 0xbd8   :  { %v3259_v8 = vpop.eup %3258 }
 0xbd9   :  { %v1470_v33 = vmul.f32 %v3259_v8, %v3610_v47 }
 0xc29   :  { %v1283_v6 = vpop.permute.xlu0 %1282 }
 0xc2a   :  { %v1285_v7 = vmul.f32 %v3257_v4, %v1283_v6 }
 0xc2c   :  { %1287 = vrot.lane.b32.xlu0 %v1285_v7, %s3311_s11 }
 0xc31   :  { %v1455_v12 = vpop.permute.xlu1 %1454 }
 0xc32   :  { %v1457_v13 = vmul.f32 %v3259_v8, %v1455_v12 }
 0xc34   :  { %1459 = vrot.lane.b32.xlu1 %v1457_v13, %s3311_s11 }
 0xc9e   :  { %v1288_v15 = vpop.permute.xlu0 %1287 }
 0xc9f   :  { %v1290_v16 = vadd.f32 %v1288_v15, %v3429_v39  ;;  %v1464_v39 = vsub.f32 1.0, %v3259_v8 }
 0xca1   :  { %3260 = vtanh.f32 %v1290_v16 }
 0xca6   :  { %v1460_v17 = vpop.permute.xlu1 %1459 }
 0xca7   :  { %v1462_v19 = vadd.f32 %v1460_v17, %v1367_v60 }
 0xca9   :  { %3262 = vtanh.f32 %v1462_v19 }
 0xcab   :  { %v3261_v20 = vpop.eup %3260 }
 0xcac   :  { %1294 = vrot.lane.b32.xlu0 %v3261_v20, %s3312_s27 }
 0xcb3   :  { %v3263_v21 = vpop.eup %3262 }
 0xcb4   :  { %1466 = vrot.lane.b32.xlu1 %v3263_v21, %s3312_s27 }
 0xd1e   :  { %v1295_v24 = vpop.permute.xlu0 %1294 }
 0xd1f   :  { %v1297_v27 = vmul.f32 %v1295_v24, %v1292_v22 }
 0xd21   :  { %v3647_v28 = vadd.f32 %v1298_v26, %v1297_v27 }
 0xd23   :  { %1474 = vrot.lane.b32.xlu0 %v3647_v28, %s3312_s27 }
 0xd26   :  { %v1467_v30 = vpop.permute.xlu1 %1466 }
 0xd27   :  { %v1469_v34 = vmul.f32 %v1467_v30, %v1464_v39 }
 0xd29   :  { %v3652_v35 = vadd.f32 %v1470_v33, %v1469_v34 }
 0xd2b   :  { %1646 = vrot.lane.b32.xlu1 %v3652_v35, %s3312_s27 }
 0xd95   :  { %v1475_v37 = vpop.permute.xlu0 %1474 }
 0xd96   :  { %2932 = vmatmul.mubr.msk.f32.vlgmr.msra.gmra.mrb[16].mxu0 %vm268_vm2, %v1475_v37  ;;  %2943 = vmatmul.mubr.msk.f32.vlgmr.msra.gmra.mrb[20].mxu1 %vm268_vm2, %v1475_v37 }
 0xd97   :  { %3147 = vmatpush3.bf16.msra.mxu0 %v3472_v5  ;;  %2953 = vmatprep.mubr.msk.f32.mxu0 %vm3309_vm1, %v3308_v0 }
 0xd98   :  { %3148 = vmatprep.subr.bf16.mxu0 %v3310_v9  ;;  %3153 = vmatpush3.bf16.msra.mxu1 %v3363_v10 }
 0xd99   :  { %3154 = vmatprep.subr.bf16.mxu1 %v3310_v9  ;;  %2964 = vmatprep.mubr.msk.f32.mxu1 %vm3309_vm1, %v3308_v0 }
 0xd9b   :  { %3150 = vmatpush3.bf16.msra.mxu0 %v3483_v11 }
 0xd9c   :  { %3157 = vmatprep.subr.bf16.mxu0 %v3310_v9  ;;  %3156 = vmatpush3.bf16.msra.mxu1 %v3379_v14 }
 0xd9d   :  { %v1647_v38 = vpop.permute.xlu1 %1646  ;;  %3163 = vmatprep.subr.bf16.mxu1 %v3310_v9 }
 0xd9e   :  { %2954 = vmatmul.mubr.msk.f32.vlgmr.msra.gmra.mrb[18].mxu0 %vm268_vm2, %v1647_v38 }
 0xd9f   :  { %3159 = vmatpush3.bf16.msra.mxu0 %v3446_v56  ;;  %2975 = vmatprep.mubr.msk.f32.mxu0 %vm3309_vm1, %v3308_v0 }
 0xda0   :  { %3160 = vmatprep.subr.bf16.mxu0 %v3310_v9 }
 0xda3   :  { %3162 = vmatpush3.bf16.msra.mxu0 %v3452_v58 }
 0xda4   :  { %3169 = vmatprep.subr.bf16.mxu0 %v3310_v9 }
 0xe69   :  { %v1544_v40 = vpop.f32.mrb[16].mxu0  ;;  %v1641_v42 = vpop.f32.mrb[20].mxu1 }
 0xe6a   :  { %v1555_v29 = vadd.f32 %v1544_v40, %v3424_v32  ;;  %v2933_v44 = vpop.f32.mrb[17].mxu0  ;;  %v2944_v45 = vpop.f32.mrb[21].mxu1  ;;  %v1548_v49 = vadd.f32 %v1544_v40, %v3427_v36  ;;  %v1642_v31 = vadd.f32 %v3513_v23, %v1641_v42 }
 0xe6c   :  { %1557 = vrot.lane.b32.xlu0 %v1555_v29, %s3311_s11  ;;  %v2604_v50 = vmul.f32 -1.442695, %v1548_v49 }
 0xe6e   :  { %3264 = vpow2.f32 %v2604_v50 }
 0xe71   :  { %v1716_v46 = vpop.f32.mrb[18].mxu0 }
 0xe72   :  { %v1727_v47 = vadd.f32 %v1716_v46, %v3505_v18  ;;  %v2955_v48 = vpop.f32.mrb[19].mxu0  ;;  %v1720_v51 = vadd.f32 %v1716_v46, %v1642_v31 }
 0xe74   :  { %1729 = vrot.lane.b32.xlu1 %v1727_v47, %s3311_s11  ;;  %v2607_v52 = vmul.f32 -1.442695, %v1720_v51 }
 0xe76   :  { %3266 = vpow2.f32 %v2607_v52 }
 0xe78   :  { %v3265_v53 = vpop.eup %3264 }
 0xe79   :  { %v1552_v54 = vadd.f32 1.0, %v3265_v53 }
 0xe7b   :  { %3268 = vrcp.f32 %v1552_v54 }
 0xe80   :  { %v3267_v55 = vpop.eup %3266 }
 0xe81   :  { %v1724_v57 = vadd.f32 1.0, %v3267_v55 }
 0xe83   :  { %3270 = vrcp.f32 %v1724_v57 }
 0xe85   :  { %v3269_v25 = vpop.eup %3268 }
 0xe86   :  { %v1567_v8 = vsub.f32 1.0, %v3269_v25  ;;  %v1573_v13 = vmul.f32 %v3269_v25, %v3647_v28 }
 0xe8d   :  { %v3271_v61 = vpop.eup %3270 }
 0xe8e   :  { %v1745_v19 = vmul.f32 %v3271_v61, %v3652_v35 }
 0xede   :  { %v1558_v59 = vpop.permute.xlu0 %1557 }
 0xedf   :  { %v1560_v60 = vmul.f32 %v3269_v25, %v1558_v59 }
 0xee1   :  { %1562 = vrot.lane.b32.xlu0 %v1560_v60, %s3311_s11 }
 0xee6   :  { %v1730_v62 = vpop.permute.xlu1 %1729 }
 0xee7   :  { %v1732_v63 = vmul.f32 %v3271_v61, %v1730_v62 }
 0xee9   :  { %1734 = vrot.lane.b32.xlu1 %v1732_v63, %s3311_s11 }
 0xf53   :  { %v1563_v1 = vpop.permute.xlu0 %1562 }
 0xf54   :  { %v1565_v2 = vadd.f32 %v1563_v1, %v3427_v36  ;;  %v1739_v36 = vsub.f32 1.0, %v3271_v61 }
 0xf56   :  { %3272 = vtanh.f32 %v1565_v2 }
 0xf5b   :  { %v1735_v3 = vpop.permute.xlu1 %1734 }
 0xf5c   :  { %v1737_v4 = vadd.f32 %v1735_v3, %v1642_v31 }
 0xf5e   :  { %3274 = vtanh.f32 %v1737_v4 }
 0xf60   :  { %v3273_v6 = vpop.eup %3272 }
 0xf61   :  { %1569 = vrot.lane.b32.xlu0 %v3273_v6, %s3312_s27 }
 0xf68   :  { %v3275_v7 = vpop.eup %3274 }
 0xf69   :  { %1741 = vrot.lane.b32.xlu1 %v3275_v7, %s3312_s27 }
 0xfd3   :  { %v1570_v12 = vpop.permute.xlu0 %1569 }
 0xfd4   :  { %v1572_v15 = vmul.f32 %v1570_v12, %v1567_v8 }
 0xfd6   :  { %v3689_v16 = vadd.f32 %v1573_v13, %v1572_v15 }
 0xfd8   :  { %1749 = vrot.lane.b32.xlu0 %v3689_v16, %s3312_s27 }
 0xfdb   :  { %v1742_v17 = vpop.permute.xlu1 %1741 }
 0xfdc   :  { %v1744_v20 = vmul.f32 %v1742_v17, %v1739_v36 }
 0xfde   :  { %v3694_v21 = vadd.f32 %v1745_v19, %v1744_v20 }
 0xfe0   :  { %1921 = vrot.lane.b32.xlu1 %v3694_v21, %s3312_s27 }
0x104a   :  { %v1750_v22 = vpop.permute.xlu0 %1749 }
0x104b   :  { %2965 = vmatmul.mubr.msk.f32.vlgmr.msra.gmra.mrb[22].mxu1 %vm268_vm2, %v1750_v22  ;;  %2976 = vmatmul.mubr.msk.f32.vlgmr.msra.gmra.mrb[20].mxu0 %vm268_vm2, %v1750_v22 }
0x104c   :  { %3165 = vmatpush3.bf16.msra.mxu1 %v3472_v5  ;;  %2986 = vmatprep.mubr.msk.f32.mxu1 %vm3309_vm1, %v3308_v0 }
0x104d   :  { %3166 = vmatprep.subr.bf16.mxu1 %v3310_v9  ;;  %3171 = vmatpush3.bf16.msra.mxu0 %v3363_v10 }
0x104e   :  { %3172 = vmatprep.subr.bf16.mxu0 %v3310_v9  ;;  %2997 = vmatprep.mubr.msk.f32.mxu0 %vm3309_vm1, %v3308_v0 }
0x1050   :  { %3168 = vmatpush3.bf16.msra.mxu1 %v3483_v11 }
0x1051   :  { %3175 = vmatprep.subr.bf16.mxu1 %v3310_v9  ;;  %3174 = vmatpush3.bf16.msra.mxu0 %v3379_v14 }
0x1052   :  { %v1922_v24 = vpop.permute.xlu1 %1921  ;;  %3181 = vmatprep.subr.bf16.mxu0 %v3310_v9 }
0x1053   :  { %2987 = vmatmul.mubr.msk.f32.vlgmr.msra.gmra.mrb[24].mxu1 %vm268_vm2, %v1922_v24 }
0x1054   :  { %3177 = vmatpush3.bf16.msra.mxu1 %v3446_v56  ;;  %3008 = vmatprep.mubr.msk.f32.mxu1 %vm3309_vm1, %v3308_v0 }
0x1055   :  { %3178 = vmatprep.subr.bf16.mxu1 %v3310_v9 }
0x1058   :  { %3180 = vmatpush3.bf16.msra.mxu1 %v3452_v58 }
0x1059   :  { %3187 = vmatprep.subr.bf16.mxu1 %v3310_v9 }
0x111e   :  { %v1819_v10 = vpop.f32.mrb[22].mxu1  ;;  %v1916_v26 = vpop.f32.mrb[20].mxu0 }
0x111f   :  { %v1830_v14 = vadd.f32 %v1819_v10, %v3424_v32  ;;  %v2966_v27 = vpop.f32.mrb[23].mxu1  ;;  %v2977_v28 = vpop.f32.mrb[21].mxu0  ;;  %v1823_v34 = vadd.f32 %v1819_v10, %v3434_v43  ;;  %v1917_v37 = vadd.f32 %v3513_v23, %v1916_v26 }
0x1121   :  { %1832 = vrot.lane.b32.xlu0 %v1830_v14, %s3311_s11  ;;  %v2609_v35 = vmul.f32 -1.442695, %v1823_v34 }
0x1123   :  { %3276 = vpow2.f32 %v2609_v35 }
0x1126   :  { %v1991_v39 = vpop.f32.mrb[24].mxu1 }
0x1127   :  { %v2002_v30 = vadd.f32 %v1991_v39, %v3505_v18  ;;  %v2988_v33 = vpop.f32.mrb[25].mxu1  ;;  %v1995_v38 = vadd.f32 %v1991_v39, %v1917_v37 }
0x1129   :  { %2004 = vrot.lane.b32.xlu1 %v2002_v30, %s3311_s11  ;;  %v2612_v40 = vmul.f32 -1.442695, %v1995_v38 }
0x112b   :  { %3278 = vpow2.f32 %v2612_v40 }
0x112d   :  { %v3277_v42 = vpop.eup %3276 }
0x112e   :  { %v1827_v29 = vadd.f32 1.0, %v3277_v42 }
0x1130   :  { %3280 = vrcp.f32 %v1827_v29 }
0x1135   :  { %v3279_v44 = vpop.eup %3278 }
0x1136   :  { %v1999_v45 = vadd.f32 1.0, %v3279_v44 }
0x1138   :  { %3282 = vrcp.f32 %v1999_v45 }
0x113a   :  { %v3281_v46 = vpop.eup %3280 }
0x113b   :  { %v1842_v25 = vsub.f32 1.0, %v3281_v46  ;;  %v1848_v60 = vmul.f32 %v3281_v46, %v3689_v16 }
0x1142   :  { %v3283_v49 = vpop.eup %3282 }
0x1143   :  { %v2020_v1 = vmul.f32 %v3283_v49, %v3694_v21 }
0x1193   :  { %v1833_v47 = vpop.permute.xlu0 %1832 }
0x1194   :  { %v1835_v48 = vmul.f32 %v3281_v46, %v1833_v47 }
0x1196   :  { %1837 = vrot.lane.b32.xlu0 %v1835_v48, %s3311_s11 }
0x119b   :  { %v2005_v50 = vpop.permute.xlu1 %2004 }
0x119c   :  { %v2007_v31 = vmul.f32 %v3283_v49, %v2005_v50 }
0x119e   :  { %2009 = vrot.lane.b32.xlu1 %v2007_v31, %s3311_s11 }
0x1208   :  { %v1838_v51 = vpop.permute.xlu0 %1837 }
0x1209   :  { %v1840_v52 = vadd.f32 %v1838_v51, %v3434_v43  ;;  %v2014_v43 = vsub.f32 1.0, %v3283_v49 }
0x120b   :  { %3284 = vtanh.f32 %v1840_v52 }
0x1210   :  { %v2010_v53 = vpop.permute.xlu1 %2009 }
0x1211   :  { %v2012_v54 = vadd.f32 %v2010_v53, %v1917_v37 }
0x1213   :  { %3286 = vtanh.f32 %v2012_v54 }
0x1215   :  { %v3285_v55 = vpop.eup %3284 }
0x1216   :  { %1844 = vrot.lane.b32.xlu0 %v3285_v55, %s3312_s27 }
0x121d   :  { %v3287_v57 = vpop.eup %3286 }
0x121e   :  { %2016 = vrot.lane.b32.xlu1 %v3287_v57, %s3312_s27 }
0x1288   :  { %v1845_v59 = vpop.permute.xlu0 %1844 }
0x1289   :  { %v1847_v61 = vmul.f32 %v1845_v59, %v1842_v25 }
0x128b   :  { %v3731_v62 = vadd.f32 %v1848_v60, %v1847_v61 }
0x128d   :  { %2024 = vrot.lane.b32.xlu0 %v3731_v62, %s3312_s27 }
0x1290   :  { %v2017_v63 = vpop.permute.xlu1 %2016 }
0x1291   :  { %v2019_v2 = vmul.f32 %v2017_v63, %v2014_v43 }
0x1293   :  { %v3736_v3 = vadd.f32 %v2020_v1, %v2019_v2  ;;  %v39_v1 = vld [vmem:[%s3811_s1 + $0x80] sm:$0xff] }
0x1295   :  { %2196 = vrot.lane.b32.xlu1 %v3736_v3, %s3312_s27 }
0x12ff   :  { %v2025_v4 = vpop.permute.xlu0 %2024 }
0x1300   :  { %2998 = vmatmul.mubr.msk.f32.vlgmr.msra.gmra.mrb[22].mxu0 %vm268_vm2, %v2025_v4  ;;  %3009 = vmatmul.mubr.msk.f32.vlgmr.msra.gmra.mrb[26].mxu1 %vm268_vm2, %v2025_v4 }
0x1301   :  { %3183 = vmatpush3.bf16.msra.mxu0 %v3472_v5  ;;  %3019 = vmatprep.mubr.msk.f32.mxu0 %vm3309_vm1, %v3308_v0 }
0x1302   :  { %3184 = vmatprep.subr.bf16.mxu0 %v3310_v9  ;;  %3189 = vmatpush3.bf16.msra.mxu1 %v3446_v56 }
0x1303   :  { %3190 = vmatprep.subr.bf16.mxu1 %v3310_v9  ;;  %3030 = vmatprep.mubr.msk.f32.mxu1 %vm3309_vm1, %v3308_v0 }
0x1305   :  { %3186 = vmatpush3.bf16.msra.mxu0 %v3483_v11 }
0x1306   :  { %3192 = vmatpush3.bf16.msra.mxu1 %v3452_v58  ;;  %3193 = vmatprep.subr.bf16.mxu0 %v3310_v9 }
0x1307   :  { %v2197_v6 = vpop.permute.xlu1 %2196  ;;  %3199 = vmatprep.subr.bf16.mxu1 %v3310_v9 }
0x1308   :  { %3020 = vmatmul.mubr.msk.f32.vlgmr.msra.gmra.mrb[24].mxu0 %vm268_vm2, %v2197_v6 }
0x1309   :  { %3195 = vmatpush3.bf16.msra.mxu0 %v3472_v5  ;;  %3041 = vmatprep.mubr.msk.f32.mxu0 %vm3309_vm1, %v3308_v0 }
0x130a   :  { %3196 = vmatprep.subr.bf16.mxu0 %v3310_v9 }
0x130d   :  { %3198 = vmatpush3.bf16.msra.mxu0 %v3483_v11 }
0x13d3   :  { %v2094_v56 = vpop.f32.mrb[22].mxu0  ;;  %v2191_v7 = vpop.f32.mrb[26].mxu1 }
0x13d4   :  { %v2105_v58 = vadd.f32 %v2094_v56, %v3424_v32  ;;  %v2999_v8 = vpop.f32.mrb[23].mxu0  ;;  %v3010_v12 = vpop.f32.mrb[27].mxu1  ;;  %v2098_v5 = vadd.f32 %v2094_v56, %v3432_v41  ;;  %v2192_v17 = vadd.f32 %v3513_v23, %v2191_v7 }
0x13d6   :  { %2107 = vrot.lane.b32.xlu1 %v2105_v58, %s3311_s11  ;;  %v2614_v36 = vmul.f32 -1.442695, %v2098_v5 }
0x13d8   :  { %3288 = vpow2.f32 %v2614_v36  ;;  %v2623_v36 = vld [vmem:[%s3813_s2 + $0x5] ss:$0 sm:$0xff] }
0x13db   :  { %v2266_v13 = vpop.f32.mrb[24].mxu0 }
0x13dc   :  { %v2277_v15 = vadd.f32 %v2266_v13, %v3505_v18  ;;  %v3021_v16 = vpop.f32.mrb[25].mxu0  ;;  %v2270_v11 = vadd.f32 %v2266_v13, %v2192_v17 }
0x13de   :  { %2279 = vrot.lane.b32.xlu0 %v2277_v15, %s3311_s11  ;;  %v2617_v19 = vmul.f32 -1.442695, %v2270_v11  ;;  %v2621_v15 = vld [vmem:[%s3813_s2 + $0x4] ss:$0 sm:$0xff]  ;;  %v2624_v11 = vld [vmem:[%s3813_s2 + $0x6] ss:$0 sm:$0xff] }
0x13e0   :  { %3290 = vpow2.f32 %v2617_v19 }
0x13e2   :  { %v3289_v32 = vpop.eup %3288 }
0x13e3   :  { %v2102_v20 = vadd.f32 1.0, %v3289_v32 }
0x13e5   :  { %3292 = vrcp.f32 %v2102_v20 }
0x13ea   :  { %v3291_v21 = vpop.eup %3290 }
0x13eb   :  { %v2274_v22 = vadd.f32 1.0, %v3291_v21 }
0x13ed   :  { %3294 = vrcp.f32 %v2274_v22 }
0x13ef   :  { %v3293_v24 = vpop.eup %3292 }
0x13f0   :  { %v2117_v38 = vsub.f32 1.0, %v3293_v24  ;;  %v2123_v42 = vmul.f32 %v3293_v24, %v3731_v62 }
0x13f7   :  { %v3295_v14 = vpop.eup %3294 }
0x13f8   :  { %v2289_v45 = vsub.f32 1.0, %v3295_v14  ;;  %v2295_v46 = vmul.f32 %v3295_v14, %v3736_v3  ;;  %v40_v3 = vld [vmem:[%s3811_s1 + $0x88] sm:$0xff] }
0x13f9   :  { %v3203_v4 = vpack.c.bf16 %v40_v3, %v39_v1 }
0x1448   :  { %v2108_v10 = vpop.permute.xlu1 %2107 }
0x1449   :  { %v2110_v26 = vmul.f32 %v3293_v24, %v2108_v10 }
0x144b   :  { %2112 = vrot.lane.b32.xlu1 %v2110_v26, %s3311_s11 }
0x1450   :  { %v2280_v27 = vpop.permute.xlu0 %2279 }
0x1451   :  { %v2282_v28 = vmul.f32 %v3295_v14, %v2280_v27 }
0x1453   :  { %2284 = vrot.lane.b32.xlu0 %v2282_v28, %s3311_s11 }
0x14bd   :  { %v2113_v39 = vpop.permute.xlu1 %2112 }
0x14be   :  { %v2115_v30 = vadd.f32 %v2113_v39, %v3432_v41 }
0x14c0   :  { %3296 = vtanh.f32 %v2115_v30 }
0x14c5   :  { %v2285_v33 = vpop.permute.xlu0 %2284 }
0x14c6   :  { %v2287_v34 = vadd.f32 %v2285_v33, %v2192_v17 }
0x14c8   :  { %3298 = vtanh.f32 %v2287_v34 }
0x14ca   :  { %v3297_v35 = vpop.eup %3296 }
0x14cb   :  { %2119 = vrot.lane.b32.xlu1 %v3297_v35, %s3312_s27 }
0x14d2   :  { %v3299_v37 = vpop.eup %3298 }
0x14d3   :  { %2291 = vrot.lane.b32.xlu0 %v3299_v37, %s3312_s27 }
0x153d   :  { %v2120_v40 = vpop.permute.xlu1 %2119 }
0x153e   :  { %v2122_v29 = vmul.f32 %v2120_v40, %v2117_v38 }
0x1540   :  { %v2124_v44 = vadd.f32 %v2123_v42, %v2122_v29 }
0x1542   :  { %2298 = vrot.lane.b32.xlu1 %v2124_v44, %s3312_s27 }
0x1545   :  { %v2292_v41 = vpop.permute.xlu0 %2291 }
0x1546   :  { %v2294_v47 = vmul.f32 %v2292_v41, %v2289_v45 }
0x1548   :  { %v2296_v48 = vadd.f32 %v2295_v46, %v2294_v47 }
0x154a   :  { %2373 = vrot.lane.b32.xlu0 %v2296_v48, %s3312_s27 }
0x15b4   :  { %v2299_v49 = vpop.permute.xlu1 %2298 }
0x15b5   :  { %3031 = vmatmul.mubr.msk.f32.vlgmr.msra.gmra.mrb[28].mxu1 %vm268_vm2, %v2299_v49 }
0x15b6   :  { %3052 = vmatprep.mubr.msk.f32.mxu1 %vm3309_vm1, %v3308_v0 }
0x15bc   :  { %v2374_v50 = vpop.permute.xlu0 %2373 }
0x15bd   :  { %3042 = vmatmul.mubr.msk.f32.vlgmr.msra.gmra.mrb[26].mxu0 %vm268_vm2, %v2374_v50 }
0x1688   :  { %v2368_v31 = vpop.f32.mrb[28].mxu1 }
0x1689   :  { %v3032_v51 = vpop.f32.mrb[29].mxu1  ;;  %v2369_v55 = vadd.f32 %v3513_v23, %v2368_v31  ;;  %v38_v23 = vld [vmem:[%s3811_s1 + $0x78] sm:$0xff] }
0x1690   :  { %v2443_v52 = vpop.f32.mrb[26].mxu0 }
0x1691   :  { %v2454_v53 = vadd.f32 %v2443_v52, %v3505_v18  ;;  %v3043_v54 = vpop.f32.mrb[27].mxu0  ;;  %v2447_v57 = vadd.f32 %v2443_v52, %v2369_v55  ;;  %v37_v18 = vld [vmem:[%s3811_s1 + $0x70] sm:$0xff] }
0x1692   :  { %v3200_v2 = vpack.c.bf16 %v38_v23, %v37_v18 }
0x1693   :  { %2456 = vrot.lane.b32.xlu0 %v2454_v53, %s3311_s11  ;;  %v2620_v25 = vmul.f32 -1.442695, %v2447_v57 }
0x1694   :  { %3201 = vmatpush3.bf16.msra.mxu1 %v3200_v2 }
0x1695   :  { %3300 = vpow2.f32 %v2620_v25  ;;  %3202 = vmatprep.subr.bf16.mxu1 %v3310_v9 }
0x1698   :  { %3204 = vmatpush3.bf16.msra.mxu1 %v3203_v4 }
0x169f   :  { %v3301_v59 = vpop.eup %3300 }
0x16a0   :  { %v2451_v60 = vadd.f32 1.0, %v3301_v59 }
0x16a2   :  { %3302 = vrcp.f32 %v2451_v60 }
0x16ac   :  { %v3303_v0 = vpop.eup %3302 }
0x16ad   :  { %v2466_v56 = vsub.f32 1.0, %v3303_v0  ;;  %v2472_v58 = vmul.f32 %v3303_v0, %v2296_v48 }
0x1705   :  { %v2457_v61 = vpop.permute.xlu0 %2456 }
0x1706   :  { %v2459_v62 = vmul.f32 %v3303_v0, %v2457_v61 }
0x1708   :  { %2461 = vrot.lane.b32.xlu1 %v2459_v62, %s3311_s11 }
0x177a   :  { %v2462_v43 = vpop.permute.xlu1 %2461 }
0x177b   :  { %v2464_v63 = vadd.f32 %v2462_v43, %v2369_v55 }
0x177d   :  { %3304 = vtanh.f32 %v2464_v63 }
0x1787   :  { %v3305_v6 = vpop.eup %3304 }
0x1788   :  { %2468 = vrot.lane.b32.xlu0 %v3305_v6, %s3312_s27 }
0x17fa   :  { %v2469_v7 = vpop.permute.xlu0 %2468 }
0x17fb   :  { %v2471_v8 = vmul.f32 %v2469_v7, %v2466_v56 }
0x17fd   :  { %v2473_v12 = vadd.f32 %v2472_v58, %v2471_v8 }
0x17ff   :  { %2479 = vrot.lane.b32.xlu1 %v2473_v12, %s3312_s27 }
0x1871   :  { %v2480_v13 = vpop.permute.xlu1 %2479 }
0x1872   :  { %3053 = vmatmul.mubr.msk.f32.vlgmr.msra.gmra.mrb[30].mxu1 %vm268_vm2, %v2480_v13 }
0x1945   :  { %v2549_v16 = vpop.f32.mrb[30].mxu1 }
0x1946   :  { %v2550_v9 = vadd.f32 %v2621_v15, %v2549_v16  ;;  %v3054_v5 = vpop.f32.mrb[31].mxu1 }
0x1948   :  { %3306 = vtanh.f32 %v2550_v9 }
0x1952   :  { %v3307_v17 = vpop.eup %3306 }
0x1953   :  { %v2558_v19 = vmul.f32 %v3307_v17, %v2623_v36 }
0x1955   :  { %v2563_v32 = vadd.f32 %v2624_v11, %v2558_v19 }
0x1957   :  { %2565 = vst.msk [vmem:[%s3814_s3] sm:$0xff] %vm2564_vm3, %v2563_v32 }

</bundles_post_ra>
